<compile_context>
chip_gen: v6e
topology: v6e:2x2x1
jax: 0.10.0
libtpu: 0.0.40
codegen_flags: <defaults>
</compile_context>

<pallas_src>
import functools

import jax
import jax.numpy as jnp
from jax import lax
from jax.experimental import pallas as pl
from jax.experimental.pallas import tpu as pltpu


# ---------------------------------------------------------------------------
# Pallas kernel: whole forward pass (gather + 2-layer LSTM over time + fc).
# ---------------------------------------------------------------------------
def _rnn_kernel(ids_ref,                      # (B, S) int32 (SMEM, scalar prefetch)
                table_ref,                    # (V, E)  f32  embedding table
                wih0_ref, whh0_ref, b0_ref,   # (E, 4H), (H, 4H), (1, 4H)  layer 0
                wih1_ref, whh1_ref, b1_ref,   # (H, 4H), (H, 4H), (1, 4H)  layer 1
                fcw_ref, fcb_ref,             # (2, 1, H), (1, 1)          fc
                out_ref,                      # (B, 1)
                *, hidden_dim, seq_len, batch):
    H, S, B = hidden_dim, seq_len, batch

    # ---- Off-critical-path work: embedding gather + layer-0 input path --------
    # Gather all S*B rows once (time-major: row t*B + b is token x[b, t], matching
    # x.permute(1, 0) in the PyTorch module).
    rows = [table_ref[pl.ds(ids_ref[b, t], 1), :]
            for t in range(S) for b in range(B)]
    x_all = jnp.concatenate(rows, axis=0)                               # (S*B, E)

    # One lane-dense MXU op computes every timestep's layer-0 input pre-activation;
    # layer-0 bias folded in here so the loop only adds the recurrent term.
    pre0 = jnp.dot(x_all, wih0_ref[...],
                   preferred_element_type=jnp.float32) + b0_ref[...]    # (S*B, 4H)

    # Hoist remaining weights out of the unrolled loop (loaded once into vregs).
    whh0 = whh0_ref[...]
    wih1 = wih1_ref[...]
    whh1 = whh1_ref[...]
    b1 = b1_ref[...]

    # ---- Single-tanh gate activation (sigmoid(z) = 0.5*(1 + tanh(z/2))) -------
    # Gate order is [i, f, g, o] (PyTorch): i/f/o need sigmoid, g needs tanh.
    half = jnp.full((1, H), 0.5, jnp.float32)
    one = jnp.full((1, H), 1.0, jnp.float32)
    zero = jnp.zeros((1, H), jnp.float32)
    pre_scale = jnp.concatenate([half, half, one, half], axis=-1)       # (1, 4H)
    post_add = jnp.concatenate([half, half, zero, half], axis=-1)       # (1, 4H)

    def activate(gates):                       # gates: (B, 4H)
        t = jnp.tanh(gates * pre_scale)        # one EUP push for all 4 gates
        a = t * pre_scale + post_add           # VPU affine correction
        return (a[:, 0 * H:1 * H], a[:, 1 * H:2 * H],
                a[:, 2 * H:3 * H], a[:, 3 * H:4 * H])

    # ---- Serial recurrence -----------------------------------------------------
    zeros = jnp.zeros((B, H), jnp.float32)
    h0, c0, h1, c1 = zeros, zeros, zeros, zeros

    # Fully unrolled time loop (S static, small): full scheduler visibility.
    for t in range(S):
        # Layer 0: input pre-activation already computed; only the h-recurrent
        # (B, H) @ (H, 4H) matmul remains on the serial chain.
        g0 = pre0[t * B:(t + 1) * B, :] + jnp.dot(
            h0, whh0, preferred_element_type=jnp.float32)
        i0, f0, gg0, o0 = activate(g0)
        c0 = f0 * c0 + i0 * gg0
        h0 = o0 * jnp.tanh(c0)

        # TODO(synk): nn.LSTM inter-layer dropout (p=0.5) applies only in training;
        # inference semantics (no dropout) are implemented here.

        # Layer 1: fused-gate matmuls, Wih / Whh kept separate (no lane concat).
        g1 = (jnp.dot(h0, wih1, preferred_element_type=jnp.float32)
              + jnp.dot(h1, whh1, preferred_element_type=jnp.float32)
              + b1)
        i1, f1, gg1, o1 = activate(g1)
        c1 = f1 * c1 + i1 * gg1
        h1 = o1 * jnp.tanh(c1)

    # fc(concat([h_layer0, h_layer1], -1)) as VPU multiply + lane reduce
    # (avoids an N=1 MXU matmul and the XLU concat).
    out_ref[...] = (jnp.sum(h0 * fcw_ref[0] + h1 * fcw_ref[1],
                            axis=-1, keepdims=True)
                    + fcb_ref[...])


# ---------------------------------------------------------------------------
# Wrapper: one-time weight layout glue + pallas_call.
# ---------------------------------------------------------------------------
def rnn_model_forward(x_idx, params):
    """Forward pass matching RNNModel.forward.

    x_idx: (batch, seq) int32 token indices.
    Returns: (batch, 1) float32.
    """
    emb_table = params["embedding"]                 # (V, E)
    B, S = x_idx.shape
    H = params["whh0"].shape[0]                     # whh0: (H, 4H)

    # Weights are already stored stacked-gate, lane-dense: (K, 4H) / (1, 4H).
    wih0, whh0, b0 = params["wih0"], params["whh0"], params["b0"]
    wih1, whh1, b1 = params["wih1"], params["whh1"], params["b1"]
    fcw_split = params["fcw"].reshape(2, H)[:, None, :]                 # (2, 1, H)
    fcb = params["fcb"]                                                 # (1, 1)

    kernel = functools.partial(_rnn_kernel, hidden_dim=H, seq_len=S, batch=B)

    def full(shape):
        # Whole array as a single resident VMEM block (total resident << 1 MiB,
        # safe even on v7x's 64 MiB VMEM).
        return pl.BlockSpec(shape, lambda i, ids: (0,) * len(shape))

    out = pl.pallas_call(
        kernel,
        out_shape=jax.ShapeDtypeStruct((B, 1), jnp.float32),
        grid_spec=pltpu.PrefetchScalarGridSpec(
            num_scalar_prefetch=1,          # token ids -> SMEM
            grid=(1,),                      # single invocation; time loop in-kernel
            in_specs=[
                full(emb_table.shape),
                full(wih0.shape), full(whh0.shape), full(b0.shape),
                full(wih1.shape), full(whh1.shape), full(b1.shape),
                full(fcw_split.shape), full(fcb.shape),
            ],
            out_specs=pl.BlockSpec((B, 1), lambda i, ids: (0, 0)),
        ),
        compiler_params=pltpu.CompilerParams(
            dimension_semantics=("arbitrary",)),
    )(x_idx.astype(jnp.int32), emb_table,
      wih0, whh0, b0, wih1, whh1, b1, fcw_split, fcb)
    return out


# ---------------------------------------------------------------------------
# Pure-JAX reference (for correctness checking only).
# ---------------------------------------------------------------------------
def _reference_forward(x_idx, params):
    emb = params["embedding"][x_idx.T]             # (S, B, E)
    H = params["whh0"].shape[0]
    B = x_idx.shape[0]

    def cell(x, h, c, wih, whh, b):
        gates = x @ wih + h @ whh + b
        i = jax.nn.sigmoid(gates[:, 0 * H:1 * H])
        f = jax.nn.sigmoid(gates[:, 1 * H:2 * H])
        g = jnp.tanh(gates[:, 2 * H:3 * H])
        o = jax.nn.sigmoid(gates[:, 3 * H:4 * H])
        c = f * c + i * g
        h = o * jnp.tanh(c)
        return h, c

    def step(carry, x_t):
        h0, c0, h1, c1 = carry
        h0, c0 = cell(x_t, h0, c0, params["wih0"], params["whh0"], params["b0"])
        h1, c1 = cell(h0, h1, c1, params["wih1"], params["whh1"], params["b1"])
        return (h0, c0, h1, c1), None

    init = tuple(jnp.zeros((B, H), jnp.float32) for _ in range(4))
    (h0, _, h1, _), _ = lax.scan(step, init, emb)
    hidden = jnp.concatenate([h0, h1], axis=-1)
    return hidden @ params["fcw"] + params["fcb"]


# ---------------------------------------------------------------------------
# Deterministic parameter construction (shapes mirror the PyTorch module).
# ---------------------------------------------------------------------------
def make_params(key, input_dim, embedding_dim, hidden_dim):
    ks = jax.random.split(key, 12)
    H, E = hidden_dim, embedding_dim
    bound = 1.0 / jnp.sqrt(H)

    def u(k, shape, b):
        return jax.random.uniform(k, shape, jnp.float32, -b, b)

    params = {
        "embedding": u(ks[0], (input_dim, E), 0.5),
        # LSTM layer 0 (PyTorch weight_ih_l0: (4H, E) -> stored transposed (E, 4H))
        "wih0": u(ks[1], (E, 4 * H), bound),
        "whh0": u(ks[2], (H, 4 * H), bound),
        "b0": (u(ks[3], (1, 4 * H), bound) + u(ks[4], (1, 4 * H), bound)),
        # LSTM layer 1
        "wih1": u(ks[5], (H, 4 * H), bound),
        "whh1": u(ks[6], (H, 4 * H), bound),
        "b1": (u(ks[7], (1, 4 * H), bound) + u(ks[8], (1, 4 * H), bound)),
        # fc: Linear(2H, 1) -> weight stored transposed (2H, 1)
        "fcw": u(ks[9], (2 * H, 1), 0.5),
        "fcb": u(ks[10], (1, 1), 1.0 / jnp.sqrt(2 * H)),
    }
    return params


if __name__ == "__main__":
    INPUT_DIM = 50       # vocab size
    EMBEDDING_DIM = 32
    HIDDEN_DIM = 32
    NUM_LAYERS = 2
    BATCH = 2
    SEQ = 8

    key = jax.random.PRNGKey(0)
    pkey, xkey = jax.random.split(key)
    params = make_params(pkey, INPUT_DIM, EMBEDDING_DIM, HIDDEN_DIM)

    # module forward receives (batch, seq) token ids
    x = jax.random.randint(xkey, (BATCH, SEQ), 0, INPUT_DIM, dtype=jnp.int32)

    out = rnn_model_forward(x, params)
    out = jax.block_until_ready(out)

    ref = _reference_forward(x, params)
    assert out.shape == (BATCH, 1)
    assert jnp.allclose(out, ref, atol=1e-4, rtol=1e-4), (out, ref)

    print("KERNEL_OK")
</pallas_src>

<mosaic_0001>
module attributes {stable_mosaic.version = 11 : i64} {
  func.func @_rnn_kernel(%arg0: i32, %arg1: memref<2x8xi32, #tpu.memory_space<smem>>, %arg2: memref<50x32xf32, #tpu.memory_space<vmem>>, %arg3: memref<32x128xf32, #tpu.memory_space<vmem>>, %arg4: memref<32x128xf32, #tpu.memory_space<vmem>>, %arg5: memref<1x128xf32, #tpu.memory_space<vmem>>, %arg6: memref<32x128xf32, #tpu.memory_space<vmem>>, %arg7: memref<32x128xf32, #tpu.memory_space<vmem>>, %arg8: memref<1x128xf32, #tpu.memory_space<vmem>>, %arg9: memref<2x1x32xf32, #tpu.memory_space<vmem>>, %arg10: memref<1x1xf32, #tpu.memory_space<vmem>>, %arg11: memref<2x1xf32, #tpu.memory_space<vmem>>) attributes {dimension_semantics = [#tpu.dimension_semantics<arbitrary>], iteration_bounds = array<i64: 1>, scalar_prefetch = 1 : i64, scratch_operands = 0 : i64, tpu.core_type = #tpu.core_type<tc>, window_params = [{pipeline_mode = #tpu.pipeline_mode<synchronous>, transform_indices = @transform_0, window_bounds = array<i64: 50, 32>}, {pipeline_mode = #tpu.pipeline_mode<synchronous>, transform_indices = @transform_1, window_bounds = array<i64: 32, 128>}, {pipeline_mode = #tpu.pipeline_mode<synchronous>, transform_indices = @transform_2, window_bounds = array<i64: 32, 128>}, {pipeline_mode = #tpu.pipeline_mode<synchronous>, transform_indices = @transform_3, window_bounds = array<i64: 1, 128>}, {pipeline_mode = #tpu.pipeline_mode<synchronous>, transform_indices = @transform_4, window_bounds = array<i64: 32, 128>}, {pipeline_mode = #tpu.pipeline_mode<synchronous>, transform_indices = @transform_5, window_bounds = array<i64: 32, 128>}, {pipeline_mode = #tpu.pipeline_mode<synchronous>, transform_indices = @transform_6, window_bounds = array<i64: 1, 128>}, {pipeline_mode = #tpu.pipeline_mode<synchronous>, transform_indices = @transform_7, window_bounds = array<i64: 2, 1, 32>}, {pipeline_mode = #tpu.pipeline_mode<synchronous>, transform_indices = @transform_8, window_bounds = array<i64: 1, 1>}, {pipeline_mode = #tpu.pipeline_mode<synchronous>, transform_indices = @transform_9, window_bounds = array<i64: 2, 1>}]} {
    %c0 = arith.constant 0 : index
    %c0_0 = arith.constant 0 : index
    %0 = memref.load %arg1[%c0, %c0_0] : memref<2x8xi32, #tpu.memory_space<smem>>
    %1 = arith.index_cast %0 : i32 to index
    %c0_1 = arith.constant 0 : index
    %2 = vector.load %arg2[%1, %c0_1] : memref<50x32xf32, #tpu.memory_space<vmem>>, vector<1x32xf32>
    %c1 = arith.constant 1 : index
    %c0_2 = arith.constant 0 : index
    %3 = memref.load %arg1[%c1, %c0_2] : memref<2x8xi32, #tpu.memory_space<smem>>
    %4 = arith.index_cast %3 : i32 to index
    %c0_3 = arith.constant 0 : index
    %5 = vector.load %arg2[%4, %c0_3] : memref<50x32xf32, #tpu.memory_space<vmem>>, vector<1x32xf32>
    %c0_4 = arith.constant 0 : index
    %c1_5 = arith.constant 1 : index
    %6 = memref.load %arg1[%c0_4, %c1_5] : memref<2x8xi32, #tpu.memory_space<smem>>
    %7 = arith.index_cast %6 : i32 to index
    %c0_6 = arith.constant 0 : index
    %8 = vector.load %arg2[%7, %c0_6] : memref<50x32xf32, #tpu.memory_space<vmem>>, vector<1x32xf32>
    %c1_7 = arith.constant 1 : index
    %c1_8 = arith.constant 1 : index
    %9 = memref.load %arg1[%c1_7, %c1_8] : memref<2x8xi32, #tpu.memory_space<smem>>
    %10 = arith.index_cast %9 : i32 to index
    %c0_9 = arith.constant 0 : index
    %11 = vector.load %arg2[%10, %c0_9] : memref<50x32xf32, #tpu.memory_space<vmem>>, vector<1x32xf32>
    %c0_10 = arith.constant 0 : index
    %c2 = arith.constant 2 : index
    %12 = memref.load %arg1[%c0_10, %c2] : memref<2x8xi32, #tpu.memory_space<smem>>
    %13 = arith.index_cast %12 : i32 to index
    %c0_11 = arith.constant 0 : index
    %14 = vector.load %arg2[%13, %c0_11] : memref<50x32xf32, #tpu.memory_space<vmem>>, vector<1x32xf32>
    %c1_12 = arith.constant 1 : index
    %c2_13 = arith.constant 2 : index
    %15 = memref.load %arg1[%c1_12, %c2_13] : memref<2x8xi32, #tpu.memory_space<smem>>
    %16 = arith.index_cast %15 : i32 to index
    %c0_14 = arith.constant 0 : index
    %17 = vector.load %arg2[%16, %c0_14] : memref<50x32xf32, #tpu.memory_space<vmem>>, vector<1x32xf32>
    %c0_15 = arith.constant 0 : index
    %c3 = arith.constant 3 : index
    %18 = memref.load %arg1[%c0_15, %c3] : memref<2x8xi32, #tpu.memory_space<smem>>
    %19 = arith.index_cast %18 : i32 to index
    %c0_16 = arith.constant 0 : index
    %20 = vector.load %arg2[%19, %c0_16] : memref<50x32xf32, #tpu.memory_space<vmem>>, vector<1x32xf32>
    %c1_17 = arith.constant 1 : index
    %c3_18 = arith.constant 3 : index
    %21 = memref.load %arg1[%c1_17, %c3_18] : memref<2x8xi32, #tpu.memory_space<smem>>
    %22 = arith.index_cast %21 : i32 to index
    %c0_19 = arith.constant 0 : index
    %23 = vector.load %arg2[%22, %c0_19] : memref<50x32xf32, #tpu.memory_space<vmem>>, vector<1x32xf32>
    %c0_20 = arith.constant 0 : index
    %c4 = arith.constant 4 : index
    %24 = memref.load %arg1[%c0_20, %c4] : memref<2x8xi32, #tpu.memory_space<smem>>
    %25 = arith.index_cast %24 : i32 to index
    %c0_21 = arith.constant 0 : index
    %26 = vector.load %arg2[%25, %c0_21] : memref<50x32xf32, #tpu.memory_space<vmem>>, vector<1x32xf32>
    %c1_22 = arith.constant 1 : index
    %c4_23 = arith.constant 4 : index
    %27 = memref.load %arg1[%c1_22, %c4_23] : memref<2x8xi32, #tpu.memory_space<smem>>
    %28 = arith.index_cast %27 : i32 to index
    %c0_24 = arith.constant 0 : index
    %29 = vector.load %arg2[%28, %c0_24] : memref<50x32xf32, #tpu.memory_space<vmem>>, vector<1x32xf32>
    %c0_25 = arith.constant 0 : index
    %c5 = arith.constant 5 : index
    %30 = memref.load %arg1[%c0_25, %c5] : memref<2x8xi32, #tpu.memory_space<smem>>
    %31 = arith.index_cast %30 : i32 to index
    %c0_26 = arith.constant 0 : index
    %32 = vector.load %arg2[%31, %c0_26] : memref<50x32xf32, #tpu.memory_space<vmem>>, vector<1x32xf32>
    %c1_27 = arith.constant 1 : index
    %c5_28 = arith.constant 5 : index
    %33 = memref.load %arg1[%c1_27, %c5_28] : memref<2x8xi32, #tpu.memory_space<smem>>
    %34 = arith.index_cast %33 : i32 to index
    %c0_29 = arith.constant 0 : index
    %35 = vector.load %arg2[%34, %c0_29] : memref<50x32xf32, #tpu.memory_space<vmem>>, vector<1x32xf32>
    %c0_30 = arith.constant 0 : index
    %c6 = arith.constant 6 : index
    %36 = memref.load %arg1[%c0_30, %c6] : memref<2x8xi32, #tpu.memory_space<smem>>
    %37 = arith.index_cast %36 : i32 to index
    %c0_31 = arith.constant 0 : index
    %38 = vector.load %arg2[%37, %c0_31] : memref<50x32xf32, #tpu.memory_space<vmem>>, vector<1x32xf32>
    %c1_32 = arith.constant 1 : index
    %c6_33 = arith.constant 6 : index
    %39 = memref.load %arg1[%c1_32, %c6_33] : memref<2x8xi32, #tpu.memory_space<smem>>
    %40 = arith.index_cast %39 : i32 to index
    %c0_34 = arith.constant 0 : index
    %41 = vector.load %arg2[%40, %c0_34] : memref<50x32xf32, #tpu.memory_space<vmem>>, vector<1x32xf32>
    %c0_35 = arith.constant 0 : index
    %c7 = arith.constant 7 : index
    %42 = memref.load %arg1[%c0_35, %c7] : memref<2x8xi32, #tpu.memory_space<smem>>
    %43 = arith.index_cast %42 : i32 to index
    %c0_36 = arith.constant 0 : index
    %44 = vector.load %arg2[%43, %c0_36] : memref<50x32xf32, #tpu.memory_space<vmem>>, vector<1x32xf32>
    %c1_37 = arith.constant 1 : index
    %c7_38 = arith.constant 7 : index
    %45 = memref.load %arg1[%c1_37, %c7_38] : memref<2x8xi32, #tpu.memory_space<smem>>
    %46 = arith.index_cast %45 : i32 to index
    %c0_39 = arith.constant 0 : index
    %47 = vector.load %arg2[%46, %c0_39] : memref<50x32xf32, #tpu.memory_space<vmem>>, vector<1x32xf32>
    %48 = tpu.concatenate %2, %5, %8, %11, %14, %17, %20, %23, %26, %29, %32, %35, %38, %41, %44, %47 in 0 : vector<1x32xf32>, vector<1x32xf32>, vector<1x32xf32>, vector<1x32xf32>, vector<1x32xf32>, vector<1x32xf32>, vector<1x32xf32>, vector<1x32xf32>, vector<1x32xf32>, vector<1x32xf32>, vector<1x32xf32>, vector<1x32xf32>, vector<1x32xf32>, vector<1x32xf32>, vector<1x32xf32>, vector<1x32xf32> -> vector<16x32xf32>
    %c0_40 = arith.constant 0 : index
    %c0_41 = arith.constant 0 : index
    %49 = vector.load %arg3[%c0_40, %c0_41] : memref<32x128xf32, #tpu.memory_space<vmem>>, vector<32x128xf32>
    %cst = arith.constant dense<0.000000e+00> : vector<16x128xf32>
    %50 = tpu.matmul %48, %49, %cst {dimension_numbers = #tpu.dot_dimension_numbers<[1], [0], [0], [1], [0, 0, 1, 1], [], []>} : vector<16x32xf32>, vector<32x128xf32>, vector<16x128xf32> -> vector<16x128xf32>
    %c0_42 = arith.constant 0 : index
    %c0_43 = arith.constant 0 : index
    %51 = vector.load %arg5[%c0_42, %c0_43] : memref<1x128xf32, #tpu.memory_space<vmem>>, vector<1x128xf32>
    %52 = vector.broadcast %51 : vector<1x128xf32> to vector<16x128xf32>
    %53 = arith.addf %50, %52 : vector<16x128xf32>
    %c0_44 = arith.constant 0 : index
    %c0_45 = arith.constant 0 : index
    %54 = vector.load %arg4[%c0_44, %c0_45] : memref<32x128xf32, #tpu.memory_space<vmem>>, vector<32x128xf32>
    %c0_46 = arith.constant 0 : index
    %c0_47 = arith.constant 0 : index
    %55 = vector.load %arg6[%c0_46, %c0_47] : memref<32x128xf32, #tpu.memory_space<vmem>>, vector<32x128xf32>
    %c0_48 = arith.constant 0 : index
    %c0_49 = arith.constant 0 : index
    %56 = vector.load %arg7[%c0_48, %c0_49] : memref<32x128xf32, #tpu.memory_space<vmem>>, vector<32x128xf32>
    %c0_50 = arith.constant 0 : index
    %c0_51 = arith.constant 0 : index
    %57 = vector.load %arg8[%c0_50, %c0_51] : memref<1x128xf32, #tpu.memory_space<vmem>>, vector<1x128xf32>
    %cst_52 = arith.constant 5.000000e-01 : f32
    %58 = vector.broadcast %cst_52 : f32 to vector<1x32xf32>
    %cst_53 = arith.constant 1.000000e+00 : f32
    %59 = vector.broadcast %cst_53 : f32 to vector<1x32xf32>
    %cst_54 = arith.constant 0.000000e+00 : f32
    %60 = vector.broadcast %cst_54 : f32 to vector<1x32xf32>
    %61 = tpu.concatenate %58, %58, %59, %58 in 1 : vector<1x32xf32>, vector<1x32xf32>, vector<1x32xf32>, vector<1x32xf32> -> vector<1x128xf32>
    %62 = tpu.concatenate %58, %58, %60, %58 in 1 : vector<1x32xf32>, vector<1x32xf32>, vector<1x32xf32>, vector<1x32xf32> -> vector<1x128xf32>
    %cst_55 = arith.constant 0.000000e+00 : f32
    %63 = vector.broadcast %cst_55 : f32 to vector<2x32xf32>
    %64 = vector.extract_strided_slice %53 {offsets = [0, 0], sizes = [2, 128], strides = [1, 1]} : vector<16x128xf32> to vector<2x128xf32>
    %cst_56 = arith.constant dense<0.000000e+00> : vector<2x128xf32>
    %65 = tpu.matmul %63, %54, %cst_56 {dimension_numbers = #tpu.dot_dimension_numbers<[1], [0], [0], [1], [0, 0, 1, 1], [], []>} : vector<2x32xf32>, vector<32x128xf32>, vector<2x128xf32> -> vector<2x128xf32>
    %66 = arith.addf %64, %65 : vector<2x128xf32>
    %67 = vector.broadcast %61 : vector<1x128xf32> to vector<2x128xf32>
    %68 = arith.mulf %66, %67 : vector<2x128xf32>
    %69 = math.tanh %68 : vector<2x128xf32>
    %70 = vector.broadcast %61 : vector<1x128xf32> to vector<2x128xf32>
    %71 = arith.mulf %69, %70 : vector<2x128xf32>
    %72 = vector.broadcast %62 : vector<1x128xf32> to vector<2x128xf32>
    %73 = arith.addf %71, %72 : vector<2x128xf32>
    %74 = vector.extract_strided_slice %73 {offsets = [0, 0], sizes = [2, 32], strides = [1, 1]} : vector<2x128xf32> to vector<2x32xf32>
    %75 = vector.extract_strided_slice %73 {offsets = [0, 32], sizes = [2, 32], strides = [1, 1]} : vector<2x128xf32> to vector<2x32xf32>
    %76 = vector.extract_strided_slice %73 {offsets = [0, 64], sizes = [2, 32], strides = [1, 1]} : vector<2x128xf32> to vector<2x32xf32>
    %77 = vector.extract_strided_slice %73 {offsets = [0, 96], sizes = [2, 32], strides = [1, 1]} : vector<2x128xf32> to vector<2x32xf32>
    %78 = arith.mulf %75, %63 : vector<2x32xf32>
    %79 = arith.mulf %74, %76 : vector<2x32xf32>
    %80 = arith.addf %78, %79 : vector<2x32xf32>
    %81 = math.tanh %80 : vector<2x32xf32>
    %82 = arith.mulf %77, %81 : vector<2x32xf32>
    %cst_57 = arith.constant dense<0.000000e+00> : vector<2x128xf32>
    %83 = tpu.matmul %82, %55, %cst_57 {dimension_numbers = #tpu.dot_dimension_numbers<[1], [0], [0], [1], [0, 0, 1, 1], [], []>} : vector<2x32xf32>, vector<32x128xf32>, vector<2x128xf32> -> vector<2x128xf32>
    %cst_58 = arith.constant dense<0.000000e+00> : vector<2x128xf32>
    %84 = tpu.matmul %63, %56, %cst_58 {dimension_numbers = #tpu.dot_dimension_numbers<[1], [0], [0], [1], [0, 0, 1, 1], [], []>} : vector<2x32xf32>, vector<32x128xf32>, vector<2x128xf32> -> vector<2x128xf32>
    %85 = arith.addf %83, %84 : vector<2x128xf32>
    %86 = vector.broadcast %57 : vector<1x128xf32> to vector<2x128xf32>
    %87 = arith.addf %85, %86 : vector<2x128xf32>
    %88 = vector.broadcast %61 : vector<1x128xf32> to vector<2x128xf32>
    %89 = arith.mulf %87, %88 : vector<2x128xf32>
    %90 = math.tanh %89 : vector<2x128xf32>
    %91 = vector.broadcast %61 : vector<1x128xf32> to vector<2x128xf32>
    %92 = arith.mulf %90, %91 : vector<2x128xf32>
    %93 = vector.broadcast %62 : vector<1x128xf32> to vector<2x128xf32>
    %94 = arith.addf %92, %93 : vector<2x128xf32>
    %95 = vector.extract_strided_slice %94 {offsets = [0, 0], sizes = [2, 32], strides = [1, 1]} : vector<2x128xf32> to vector<2x32xf32>
    %96 = vector.extract_strided_slice %94 {offsets = [0, 32], sizes = [2, 32], strides = [1, 1]} : vector<2x128xf32> to vector<2x32xf32>
    %97 = vector.extract_strided_slice %94 {offsets = [0, 64], sizes = [2, 32], strides = [1, 1]} : vector<2x128xf32> to vector<2x32xf32>
    %98 = vector.extract_strided_slice %94 {offsets = [0, 96], sizes = [2, 32], strides = [1, 1]} : vector<2x128xf32> to vector<2x32xf32>
    %99 = arith.mulf %96, %63 : vector<2x32xf32>
    %100 = arith.mulf %95, %97 : vector<2x32xf32>
    %101 = arith.addf %99, %100 : vector<2x32xf32>
    %102 = math.tanh %101 : vector<2x32xf32>
    %103 = arith.mulf %98, %102 : vector<2x32xf32>
    %104 = vector.extract_strided_slice %53 {offsets = [2, 0], sizes = [2, 128], strides = [1, 1]} : vector<16x128xf32> to vector<2x128xf32>
    %cst_59 = arith.constant dense<0.000000e+00> : vector<2x128xf32>
    %105 = tpu.matmul %82, %54, %cst_59 {dimension_numbers = #tpu.dot_dimension_numbers<[1], [0], [0], [1], [0, 0, 1, 1], [], []>} : vector<2x32xf32>, vector<32x128xf32>, vector<2x128xf32> -> vector<2x128xf32>
    %106 = arith.addf %104, %105 : vector<2x128xf32>
    %107 = vector.broadcast %61 : vector<1x128xf32> to vector<2x128xf32>
    %108 = arith.mulf %106, %107 : vector<2x128xf32>
    %109 = math.tanh %108 : vector<2x128xf32>
    %110 = vector.broadcast %61 : vector<1x128xf32> to vector<2x128xf32>
    %111 = arith.mulf %109, %110 : vector<2x128xf32>
    %112 = vector.broadcast %62 : vector<1x128xf32> to vector<2x128xf32>
    %113 = arith.addf %111, %112 : vector<2x128xf32>
    %114 = vector.extract_strided_slice %113 {offsets = [0, 0], sizes = [2, 32], strides = [1, 1]} : vector<2x128xf32> to vector<2x32xf32>
    %115 = vector.extract_strided_slice %113 {offsets = [0, 32], sizes = [2, 32], strides = [1, 1]} : vector<2x128xf32> to vector<2x32xf32>
    %116 = vector.extract_strided_slice %113 {offsets = [0, 64], sizes = [2, 32], strides = [1, 1]} : vector<2x128xf32> to vector<2x32xf32>
    %117 = vector.extract_strided_slice %113 {offsets = [0, 96], sizes = [2, 32], strides = [1, 1]} : vector<2x128xf32> to vector<2x32xf32>
    %118 = arith.mulf %115, %80 : vector<2x32xf32>
    %119 = arith.mulf %114, %116 : vector<2x32xf32>
    %120 = arith.addf %118, %119 : vector<2x32xf32>
    %121 = math.tanh %120 : vector<2x32xf32>
    %122 = arith.mulf %117, %121 : vector<2x32xf32>
    %cst_60 = arith.constant dense<0.000000e+00> : vector<2x128xf32>
    %123 = tpu.matmul %122, %55, %cst_60 {dimension_numbers = #tpu.dot_dimension_numbers<[1], [0], [0], [1], [0, 0, 1, 1], [], []>} : vector<2x32xf32>, vector<32x128xf32>, vector<2x128xf32> -> vector<2x128xf32>
    %cst_61 = arith.constant dense<0.000000e+00> : vector<2x128xf32>
    %124 = tpu.matmul %103, %56, %cst_61 {dimension_numbers = #tpu.dot_dimension_numbers<[1], [0], [0], [1], [0, 0, 1, 1], [], []>} : vector<2x32xf32>, vector<32x128xf32>, vector<2x128xf32> -> vector<2x128xf32>
    %125 = arith.addf %123, %124 : vector<2x128xf32>
    %126 = vector.broadcast %57 : vector<1x128xf32> to vector<2x128xf32>
    %127 = arith.addf %125, %126 : vector<2x128xf32>
    %128 = vector.broadcast %61 : vector<1x128xf32> to vector<2x128xf32>
    %129 = arith.mulf %127, %128 : vector<2x128xf32>
    %130 = math.tanh %129 : vector<2x128xf32>
    %131 = vector.broadcast %61 : vector<1x128xf32> to vector<2x128xf32>
    %132 = arith.mulf %130, %131 : vector<2x128xf32>
    %133 = vector.broadcast %62 : vector<1x128xf32> to vector<2x128xf32>
    %134 = arith.addf %132, %133 : vector<2x128xf32>
    %135 = vector.extract_strided_slice %134 {offsets = [0, 0], sizes = [2, 32], strides = [1, 1]} : vector<2x128xf32> to vector<2x32xf32>
    %136 = vector.extract_strided_slice %134 {offsets = [0, 32], sizes = [2, 32], strides = [1, 1]} : vector<2x128xf32> to vector<2x32xf32>
    %137 = vector.extract_strided_slice %134 {offsets = [0, 64], sizes = [2, 32], strides = [1, 1]} : vector<2x128xf32> to vector<2x32xf32>
    %138 = vector.extract_strided_slice %134 {offsets = [0, 96], sizes = [2, 32], strides = [1, 1]} : vector<2x128xf32> to vector<2x32xf32>
    %139 = arith.mulf %136, %101 : vector<2x32xf32>
    %140 = arith.mulf %135, %137 : vector<2x32xf32>
    %141 = arith.addf %139, %140 : vector<2x32xf32>
    %142 = math.tanh %141 : vector<2x32xf32>
    %143 = arith.mulf %138, %142 : vector<2x32xf32>
    %144 = vector.extract_strided_slice %53 {offsets = [4, 0], sizes = [2, 128], strides = [1, 1]} : vector<16x128xf32> to vector<2x128xf32>
    %cst_62 = arith.constant dense<0.000000e+00> : vector<2x128xf32>
    %145 = tpu.matmul %122, %54, %cst_62 {dimension_numbers = #tpu.dot_dimension_numbers<[1], [0], [0], [1], [0, 0, 1, 1], [], []>} : vector<2x32xf32>, vector<32x128xf32>, vector<2x128xf32> -> vector<2x128xf32>
    %146 = arith.addf %144, %145 : vector<2x128xf32>
    %147 = vector.broadcast %61 : vector<1x128xf32> to vector<2x128xf32>
    %148 = arith.mulf %146, %147 : vector<2x128xf32>
    %149 = math.tanh %148 : vector<2x128xf32>
    %150 = vector.broadcast %61 : vector<1x128xf32> to vector<2x128xf32>
    %151 = arith.mulf %149, %150 : vector<2x128xf32>
    %152 = vector.broadcast %62 : vector<1x128xf32> to vector<2x128xf32>
    %153 = arith.addf %151, %152 : vector<2x128xf32>
    %154 = vector.extract_strided_slice %153 {offsets = [0, 0], sizes = [2, 32], strides = [1, 1]} : vector<2x128xf32> to vector<2x32xf32>
    %155 = vector.extract_strided_slice %153 {offsets = [0, 32], sizes = [2, 32], strides = [1, 1]} : vector<2x128xf32> to vector<2x32xf32>
    %156 = vector.extract_strided_slice %153 {offsets = [0, 64], sizes = [2, 32], strides = [1, 1]} : vector<2x128xf32> to vector<2x32xf32>
    %157 = vector.extract_strided_slice %153 {offsets = [0, 96], sizes = [2, 32], strides = [1, 1]} : vector<2x128xf32> to vector<2x32xf32>
    %158 = arith.mulf %155, %120 : vector<2x32xf32>
    %159 = arith.mulf %154, %156 : vector<2x32xf32>
    %160 = arith.addf %158, %159 : vector<2x32xf32>
    %161 = math.tanh %160 : vector<2x32xf32>
    %162 = arith.mulf %157, %161 : vector<2x32xf32>
    %cst_63 = arith.constant dense<0.000000e+00> : vector<2x128xf32>
    %163 = tpu.matmul %162, %55, %cst_63 {dimension_numbers = #tpu.dot_dimension_numbers<[1], [0], [0], [1], [0, 0, 1, 1], [], []>} : vector<2x32xf32>, vector<32x128xf32>, vector<2x128xf32> -> vector<2x128xf32>
    %cst_64 = arith.constant dense<0.000000e+00> : vector<2x128xf32>
    %164 = tpu.matmul %143, %56, %cst_64 {dimension_numbers = #tpu.dot_dimension_numbers<[1], [0], [0], [1], [0, 0, 1, 1], [], []>} : vector<2x32xf32>, vector<32x128xf32>, vector<2x128xf32> -> vector<2x128xf32>
    %165 = arith.addf %163, %164 : vector<2x128xf32>
    %166 = vector.broadcast %57 : vector<1x128xf32> to vector<2x128xf32>
    %167 = arith.addf %165, %166 : vector<2x128xf32>
    %168 = vector.broadcast %61 : vector<1x128xf32> to vector<2x128xf32>
    %169 = arith.mulf %167, %168 : vector<2x128xf32>
    %170 = math.tanh %169 : vector<2x128xf32>
    %171 = vector.broadcast %61 : vector<1x128xf32> to vector<2x128xf32>
    %172 = arith.mulf %170, %171 : vector<2x128xf32>
    %173 = vector.broadcast %62 : vector<1x128xf32> to vector<2x128xf32>
    %174 = arith.addf %172, %173 : vector<2x128xf32>
    %175 = vector.extract_strided_slice %174 {offsets = [0, 0], sizes = [2, 32], strides = [1, 1]} : vector<2x128xf32> to vector<2x32xf32>
    %176 = vector.extract_strided_slice %174 {offsets = [0, 32], sizes = [2, 32], strides = [1, 1]} : vector<2x128xf32> to vector<2x32xf32>
    %177 = vector.extract_strided_slice %174 {offsets = [0, 64], sizes = [2, 32], strides = [1, 1]} : vector<2x128xf32> to vector<2x32xf32>
    %178 = vector.extract_strided_slice %174 {offsets = [0, 96], sizes = [2, 32], strides = [1, 1]} : vector<2x128xf32> to vector<2x32xf32>
    %179 = arith.mulf %176, %141 : vector<2x32xf32>
    %180 = arith.mulf %175, %177 : vector<2x32xf32>
    %181 = arith.addf %179, %180 : vector<2x32xf32>
    %182 = math.tanh %181 : vector<2x32xf32>
    %183 = arith.mulf %178, %182 : vector<2x32xf32>
    %184 = vector.extract_strided_slice %53 {offsets = [6, 0], sizes = [2, 128], strides = [1, 1]} : vector<16x128xf32> to vector<2x128xf32>
    %cst_65 = arith.constant dense<0.000000e+00> : vector<2x128xf32>
    %185 = tpu.matmul %162, %54, %cst_65 {dimension_numbers = #tpu.dot_dimension_numbers<[1], [0], [0], [1], [0, 0, 1, 1], [], []>} : vector<2x32xf32>, vector<32x128xf32>, vector<2x128xf32> -> vector<2x128xf32>
    %186 = arith.addf %184, %185 : vector<2x128xf32>
    %187 = vector.broadcast %61 : vector<1x128xf32> to vector<2x128xf32>
    %188 = arith.mulf %186, %187 : vector<2x128xf32>
    %189 = math.tanh %188 : vector<2x128xf32>
    %190 = vector.broadcast %61 : vector<1x128xf32> to vector<2x128xf32>
    %191 = arith.mulf %189, %190 : vector<2x128xf32>
    %192 = vector.broadcast %62 : vector<1x128xf32> to vector<2x128xf32>
    %193 = arith.addf %191, %192 : vector<2x128xf32>
    %194 = vector.extract_strided_slice %193 {offsets = [0, 0], sizes = [2, 32], strides = [1, 1]} : vector<2x128xf32> to vector<2x32xf32>
    %195 = vector.extract_strided_slice %193 {offsets = [0, 32], sizes = [2, 32], strides = [1, 1]} : vector<2x128xf32> to vector<2x32xf32>
    %196 = vector.extract_strided_slice %193 {offsets = [0, 64], sizes = [2, 32], strides = [1, 1]} : vector<2x128xf32> to vector<2x32xf32>
    %197 = vector.extract_strided_slice %193 {offsets = [0, 96], sizes = [2, 32], strides = [1, 1]} : vector<2x128xf32> to vector<2x32xf32>
    %198 = arith.mulf %195, %160 : vector<2x32xf32>
    %199 = arith.mulf %194, %196 : vector<2x32xf32>
    %200 = arith.addf %198, %199 : vector<2x32xf32>
    %201 = math.tanh %200 : vector<2x32xf32>
    %202 = arith.mulf %197, %201 : vector<2x32xf32>
    %cst_66 = arith.constant dense<0.000000e+00> : vector<2x128xf32>
    %203 = tpu.matmul %202, %55, %cst_66 {dimension_numbers = #tpu.dot_dimension_numbers<[1], [0], [0], [1], [0, 0, 1, 1], [], []>} : vector<2x32xf32>, vector<32x128xf32>, vector<2x128xf32> -> vector<2x128xf32>
    %cst_67 = arith.constant dense<0.000000e+00> : vector<2x128xf32>
    %204 = tpu.matmul %183, %56, %cst_67 {dimension_numbers = #tpu.dot_dimension_numbers<[1], [0], [0], [1], [0, 0, 1, 1], [], []>} : vector<2x32xf32>, vector<32x128xf32>, vector<2x128xf32> -> vector<2x128xf32>
    %205 = arith.addf %203, %204 : vector<2x128xf32>
    %206 = vector.broadcast %57 : vector<1x128xf32> to vector<2x128xf32>
    %207 = arith.addf %205, %206 : vector<2x128xf32>
    %208 = vector.broadcast %61 : vector<1x128xf32> to vector<2x128xf32>
    %209 = arith.mulf %207, %208 : vector<2x128xf32>
    %210 = math.tanh %209 : vector<2x128xf32>
    %211 = vector.broadcast %61 : vector<1x128xf32> to vector<2x128xf32>
    %212 = arith.mulf %210, %211 : vector<2x128xf32>
    %213 = vector.broadcast %62 : vector<1x128xf32> to vector<2x128xf32>
    %214 = arith.addf %212, %213 : vector<2x128xf32>
    %215 = vector.extract_strided_slice %214 {offsets = [0, 0], sizes = [2, 32], strides = [1, 1]} : vector<2x128xf32> to vector<2x32xf32>
    %216 = vector.extract_strided_slice %214 {offsets = [0, 32], sizes = [2, 32], strides = [1, 1]} : vector<2x128xf32> to vector<2x32xf32>
    %217 = vector.extract_strided_slice %214 {offsets = [0, 64], sizes = [2, 32], strides = [1, 1]} : vector<2x128xf32> to vector<2x32xf32>
    %218 = vector.extract_strided_slice %214 {offsets = [0, 96], sizes = [2, 32], strides = [1, 1]} : vector<2x128xf32> to vector<2x32xf32>
    %219 = arith.mulf %216, %181 : vector<2x32xf32>
    %220 = arith.mulf %215, %217 : vector<2x32xf32>
    %221 = arith.addf %219, %220 : vector<2x32xf32>
    %222 = math.tanh %221 : vector<2x32xf32>
    %223 = arith.mulf %218, %222 : vector<2x32xf32>
    %224 = vector.extract_strided_slice %53 {offsets = [8, 0], sizes = [2, 128], strides = [1, 1]} : vector<16x128xf32> to vector<2x128xf32>
    %cst_68 = arith.constant dense<0.000000e+00> : vector<2x128xf32>
    %225 = tpu.matmul %202, %54, %cst_68 {dimension_numbers = #tpu.dot_dimension_numbers<[1], [0], [0], [1], [0, 0, 1, 1], [], []>} : vector<2x32xf32>, vector<32x128xf32>, vector<2x128xf32> -> vector<2x128xf32>
    %226 = arith.addf %224, %225 : vector<2x128xf32>
    %227 = vector.broadcast %61 : vector<1x128xf32> to vector<2x128xf32>
    %228 = arith.mulf %226, %227 : vector<2x128xf32>
    %229 = math.tanh %228 : vector<2x128xf32>
    %230 = vector.broadcast %61 : vector<1x128xf32> to vector<2x128xf32>
    %231 = arith.mulf %229, %230 : vector<2x128xf32>
    %232 = vector.broadcast %62 : vector<1x128xf32> to vector<2x128xf32>
    %233 = arith.addf %231, %232 : vector<2x128xf32>
    %234 = vector.extract_strided_slice %233 {offsets = [0, 0], sizes = [2, 32], strides = [1, 1]} : vector<2x128xf32> to vector<2x32xf32>
    %235 = vector.extract_strided_slice %233 {offsets = [0, 32], sizes = [2, 32], strides = [1, 1]} : vector<2x128xf32> to vector<2x32xf32>
    %236 = vector.extract_strided_slice %233 {offsets = [0, 64], sizes = [2, 32], strides = [1, 1]} : vector<2x128xf32> to vector<2x32xf32>
    %237 = vector.extract_strided_slice %233 {offsets = [0, 96], sizes = [2, 32], strides = [1, 1]} : vector<2x128xf32> to vector<2x32xf32>
    %238 = arith.mulf %235, %200 : vector<2x32xf32>
    %239 = arith.mulf %234, %236 : vector<2x32xf32>
    %240 = arith.addf %238, %239 : vector<2x32xf32>
    %241 = math.tanh %240 : vector<2x32xf32>
    %242 = arith.mulf %237, %241 : vector<2x32xf32>
    %cst_69 = arith.constant dense<0.000000e+00> : vector<2x128xf32>
    %243 = tpu.matmul %242, %55, %cst_69 {dimension_numbers = #tpu.dot_dimension_numbers<[1], [0], [0], [1], [0, 0, 1, 1], [], []>} : vector<2x32xf32>, vector<32x128xf32>, vector<2x128xf32> -> vector<2x128xf32>
    %cst_70 = arith.constant dense<0.000000e+00> : vector<2x128xf32>
    %244 = tpu.matmul %223, %56, %cst_70 {dimension_numbers = #tpu.dot_dimension_numbers<[1], [0], [0], [1], [0, 0, 1, 1], [], []>} : vector<2x32xf32>, vector<32x128xf32>, vector<2x128xf32> -> vector<2x128xf32>
    %245 = arith.addf %243, %244 : vector<2x128xf32>
    %246 = vector.broadcast %57 : vector<1x128xf32> to vector<2x128xf32>
    %247 = arith.addf %245, %246 : vector<2x128xf32>
    %248 = vector.broadcast %61 : vector<1x128xf32> to vector<2x128xf32>
    %249 = arith.mulf %247, %248 : vector<2x128xf32>
    %250 = math.tanh %249 : vector<2x128xf32>
    %251 = vector.broadcast %61 : vector<1x128xf32> to vector<2x128xf32>
    %252 = arith.mulf %250, %251 : vector<2x128xf32>
    %253 = vector.broadcast %62 : vector<1x128xf32> to vector<2x128xf32>
    %254 = arith.addf %252, %253 : vector<2x128xf32>
    %255 = vector.extract_strided_slice %254 {offsets = [0, 0], sizes = [2, 32], strides = [1, 1]} : vector<2x128xf32> to vector<2x32xf32>
    %256 = vector.extract_strided_slice %254 {offsets = [0, 32], sizes = [2, 32], strides = [1, 1]} : vector<2x128xf32> to vector<2x32xf32>
    %257 = vector.extract_strided_slice %254 {offsets = [0, 64], sizes = [2, 32], strides = [1, 1]} : vector<2x128xf32> to vector<2x32xf32>
    %258 = vector.extract_strided_slice %254 {offsets = [0, 96], sizes = [2, 32], strides = [1, 1]} : vector<2x128xf32> to vector<2x32xf32>
    %259 = arith.mulf %256, %221 : vector<2x32xf32>
    %260 = arith.mulf %255, %257 : vector<2x32xf32>
    %261 = arith.addf %259, %260 : vector<2x32xf32>
    %262 = math.tanh %261 : vector<2x32xf32>
    %263 = arith.mulf %258, %262 : vector<2x32xf32>
    %264 = vector.extract_strided_slice %53 {offsets = [10, 0], sizes = [2, 128], strides = [1, 1]} : vector<16x128xf32> to vector<2x128xf32>
    %cst_71 = arith.constant dense<0.000000e+00> : vector<2x128xf32>
    %265 = tpu.matmul %242, %54, %cst_71 {dimension_numbers = #tpu.dot_dimension_numbers<[1], [0], [0], [1], [0, 0, 1, 1], [], []>} : vector<2x32xf32>, vector<32x128xf32>, vector<2x128xf32> -> vector<2x128xf32>
    %266 = arith.addf %264, %265 : vector<2x128xf32>
    %267 = vector.broadcast %61 : vector<1x128xf32> to vector<2x128xf32>
    %268 = arith.mulf %266, %267 : vector<2x128xf32>
    %269 = math.tanh %268 : vector<2x128xf32>
    %270 = vector.broadcast %61 : vector<1x128xf32> to vector<2x128xf32>
    %271 = arith.mulf %269, %270 : vector<2x128xf32>
    %272 = vector.broadcast %62 : vector<1x128xf32> to vector<2x128xf32>
    %273 = arith.addf %271, %272 : vector<2x128xf32>
    %274 = vector.extract_strided_slice %273 {offsets = [0, 0], sizes = [2, 32], strides = [1, 1]} : vector<2x128xf32> to vector<2x32xf32>
    %275 = vector.extract_strided_slice %273 {offsets = [0, 32], sizes = [2, 32], strides = [1, 1]} : vector<2x128xf32> to vector<2x32xf32>
    %276 = vector.extract_strided_slice %273 {offsets = [0, 64], sizes = [2, 32], strides = [1, 1]} : vector<2x128xf32> to vector<2x32xf32>
    %277 = vector.extract_strided_slice %273 {offsets = [0, 96], sizes = [2, 32], strides = [1, 1]} : vector<2x128xf32> to vector<2x32xf32>
    %278 = arith.mulf %275, %240 : vector<2x32xf32>
    %279 = arith.mulf %274, %276 : vector<2x32xf32>
    %280 = arith.addf %278, %279 : vector<2x32xf32>
    %281 = math.tanh %280 : vector<2x32xf32>
    %282 = arith.mulf %277, %281 : vector<2x32xf32>
    %cst_72 = arith.constant dense<0.000000e+00> : vector<2x128xf32>
    %283 = tpu.matmul %282, %55, %cst_72 {dimension_numbers = #tpu.dot_dimension_numbers<[1], [0], [0], [1], [0, 0, 1, 1], [], []>} : vector<2x32xf32>, vector<32x128xf32>, vector<2x128xf32> -> vector<2x128xf32>
    %cst_73 = arith.constant dense<0.000000e+00> : vector<2x128xf32>
    %284 = tpu.matmul %263, %56, %cst_73 {dimension_numbers = #tpu.dot_dimension_numbers<[1], [0], [0], [1], [0, 0, 1, 1], [], []>} : vector<2x32xf32>, vector<32x128xf32>, vector<2x128xf32> -> vector<2x128xf32>
    %285 = arith.addf %283, %284 : vector<2x128xf32>
    %286 = vector.broadcast %57 : vector<1x128xf32> to vector<2x128xf32>
    %287 = arith.addf %285, %286 : vector<2x128xf32>
    %288 = vector.broadcast %61 : vector<1x128xf32> to vector<2x128xf32>
    %289 = arith.mulf %287, %288 : vector<2x128xf32>
    %290 = math.tanh %289 : vector<2x128xf32>
    %291 = vector.broadcast %61 : vector<1x128xf32> to vector<2x128xf32>
    %292 = arith.mulf %290, %291 : vector<2x128xf32>
    %293 = vector.broadcast %62 : vector<1x128xf32> to vector<2x128xf32>
    %294 = arith.addf %292, %293 : vector<2x128xf32>
    %295 = vector.extract_strided_slice %294 {offsets = [0, 0], sizes = [2, 32], strides = [1, 1]} : vector<2x128xf32> to vector<2x32xf32>
    %296 = vector.extract_strided_slice %294 {offsets = [0, 32], sizes = [2, 32], strides = [1, 1]} : vector<2x128xf32> to vector<2x32xf32>
    %297 = vector.extract_strided_slice %294 {offsets = [0, 64], sizes = [2, 32], strides = [1, 1]} : vector<2x128xf32> to vector<2x32xf32>
    %298 = vector.extract_strided_slice %294 {offsets = [0, 96], sizes = [2, 32], strides = [1, 1]} : vector<2x128xf32> to vector<2x32xf32>
    %299 = arith.mulf %296, %261 : vector<2x32xf32>
    %300 = arith.mulf %295, %297 : vector<2x32xf32>
    %301 = arith.addf %299, %300 : vector<2x32xf32>
    %302 = math.tanh %301 : vector<2x32xf32>
    %303 = arith.mulf %298, %302 : vector<2x32xf32>
    %304 = vector.extract_strided_slice %53 {offsets = [12, 0], sizes = [2, 128], strides = [1, 1]} : vector<16x128xf32> to vector<2x128xf32>
    %cst_74 = arith.constant dense<0.000000e+00> : vector<2x128xf32>
    %305 = tpu.matmul %282, %54, %cst_74 {dimension_numbers = #tpu.dot_dimension_numbers<[1], [0], [0], [1], [0, 0, 1, 1], [], []>} : vector<2x32xf32>, vector<32x128xf32>, vector<2x128xf32> -> vector<2x128xf32>
    %306 = arith.addf %304, %305 : vector<2x128xf32>
    %307 = vector.broadcast %61 : vector<1x128xf32> to vector<2x128xf32>
    %308 = arith.mulf %306, %307 : vector<2x128xf32>
    %309 = math.tanh %308 : vector<2x128xf32>
    %310 = vector.broadcast %61 : vector<1x128xf32> to vector<2x128xf32>
    %311 = arith.mulf %309, %310 : vector<2x128xf32>
    %312 = vector.broadcast %62 : vector<1x128xf32> to vector<2x128xf32>
    %313 = arith.addf %311, %312 : vector<2x128xf32>
    %314 = vector.extract_strided_slice %313 {offsets = [0, 0], sizes = [2, 32], strides = [1, 1]} : vector<2x128xf32> to vector<2x32xf32>
    %315 = vector.extract_strided_slice %313 {offsets = [0, 32], sizes = [2, 32], strides = [1, 1]} : vector<2x128xf32> to vector<2x32xf32>
    %316 = vector.extract_strided_slice %313 {offsets = [0, 64], sizes = [2, 32], strides = [1, 1]} : vector<2x128xf32> to vector<2x32xf32>
    %317 = vector.extract_strided_slice %313 {offsets = [0, 96], sizes = [2, 32], strides = [1, 1]} : vector<2x128xf32> to vector<2x32xf32>
    %318 = arith.mulf %315, %280 : vector<2x32xf32>
    %319 = arith.mulf %314, %316 : vector<2x32xf32>
    %320 = arith.addf %318, %319 : vector<2x32xf32>
    %321 = math.tanh %320 : vector<2x32xf32>
    %322 = arith.mulf %317, %321 : vector<2x32xf32>
    %cst_75 = arith.constant dense<0.000000e+00> : vector<2x128xf32>
    %323 = tpu.matmul %322, %55, %cst_75 {dimension_numbers = #tpu.dot_dimension_numbers<[1], [0], [0], [1], [0, 0, 1, 1], [], []>} : vector<2x32xf32>, vector<32x128xf32>, vector<2x128xf32> -> vector<2x128xf32>
    %cst_76 = arith.constant dense<0.000000e+00> : vector<2x128xf32>
    %324 = tpu.matmul %303, %56, %cst_76 {dimension_numbers = #tpu.dot_dimension_numbers<[1], [0], [0], [1], [0, 0, 1, 1], [], []>} : vector<2x32xf32>, vector<32x128xf32>, vector<2x128xf32> -> vector<2x128xf32>
    %325 = arith.addf %323, %324 : vector<2x128xf32>
    %326 = vector.broadcast %57 : vector<1x128xf32> to vector<2x128xf32>
    %327 = arith.addf %325, %326 : vector<2x128xf32>
    %328 = vector.broadcast %61 : vector<1x128xf32> to vector<2x128xf32>
    %329 = arith.mulf %327, %328 : vector<2x128xf32>
    %330 = math.tanh %329 : vector<2x128xf32>
    %331 = vector.broadcast %61 : vector<1x128xf32> to vector<2x128xf32>
    %332 = arith.mulf %330, %331 : vector<2x128xf32>
    %333 = vector.broadcast %62 : vector<1x128xf32> to vector<2x128xf32>
    %334 = arith.addf %332, %333 : vector<2x128xf32>
    %335 = vector.extract_strided_slice %334 {offsets = [0, 0], sizes = [2, 32], strides = [1, 1]} : vector<2x128xf32> to vector<2x32xf32>
    %336 = vector.extract_strided_slice %334 {offsets = [0, 32], sizes = [2, 32], strides = [1, 1]} : vector<2x128xf32> to vector<2x32xf32>
    %337 = vector.extract_strided_slice %334 {offsets = [0, 64], sizes = [2, 32], strides = [1, 1]} : vector<2x128xf32> to vector<2x32xf32>
    %338 = vector.extract_strided_slice %334 {offsets = [0, 96], sizes = [2, 32], strides = [1, 1]} : vector<2x128xf32> to vector<2x32xf32>
    %339 = arith.mulf %336, %301 : vector<2x32xf32>
    %340 = arith.mulf %335, %337 : vector<2x32xf32>
    %341 = arith.addf %339, %340 : vector<2x32xf32>
    %342 = math.tanh %341 : vector<2x32xf32>
    %343 = arith.mulf %338, %342 : vector<2x32xf32>
    %344 = vector.extract_strided_slice %53 {offsets = [14, 0], sizes = [2, 128], strides = [1, 1]} : vector<16x128xf32> to vector<2x128xf32>
    %cst_77 = arith.constant dense<0.000000e+00> : vector<2x128xf32>
    %345 = tpu.matmul %322, %54, %cst_77 {dimension_numbers = #tpu.dot_dimension_numbers<[1], [0], [0], [1], [0, 0, 1, 1], [], []>} : vector<2x32xf32>, vector<32x128xf32>, vector<2x128xf32> -> vector<2x128xf32>
    %346 = arith.addf %344, %345 : vector<2x128xf32>
    %347 = vector.broadcast %61 : vector<1x128xf32> to vector<2x128xf32>
    %348 = arith.mulf %346, %347 : vector<2x128xf32>
    %349 = math.tanh %348 : vector<2x128xf32>
    %350 = vector.broadcast %61 : vector<1x128xf32> to vector<2x128xf32>
    %351 = arith.mulf %349, %350 : vector<2x128xf32>
    %352 = vector.broadcast %62 : vector<1x128xf32> to vector<2x128xf32>
    %353 = arith.addf %351, %352 : vector<2x128xf32>
    %354 = vector.extract_strided_slice %353 {offsets = [0, 0], sizes = [2, 32], strides = [1, 1]} : vector<2x128xf32> to vector<2x32xf32>
    %355 = vector.extract_strided_slice %353 {offsets = [0, 32], sizes = [2, 32], strides = [1, 1]} : vector<2x128xf32> to vector<2x32xf32>
    %356 = vector.extract_strided_slice %353 {offsets = [0, 64], sizes = [2, 32], strides = [1, 1]} : vector<2x128xf32> to vector<2x32xf32>
    %357 = vector.extract_strided_slice %353 {offsets = [0, 96], sizes = [2, 32], strides = [1, 1]} : vector<2x128xf32> to vector<2x32xf32>
    %358 = arith.mulf %355, %320 : vector<2x32xf32>
    %359 = arith.mulf %354, %356 : vector<2x32xf32>
    %360 = arith.addf %358, %359 : vector<2x32xf32>
    %361 = math.tanh %360 : vector<2x32xf32>
    %362 = arith.mulf %357, %361 : vector<2x32xf32>
    %cst_78 = arith.constant dense<0.000000e+00> : vector<2x128xf32>
    %363 = tpu.matmul %362, %55, %cst_78 {dimension_numbers = #tpu.dot_dimension_numbers<[1], [0], [0], [1], [0, 0, 1, 1], [], []>} : vector<2x32xf32>, vector<32x128xf32>, vector<2x128xf32> -> vector<2x128xf32>
    %cst_79 = arith.constant dense<0.000000e+00> : vector<2x128xf32>
    %364 = tpu.matmul %343, %56, %cst_79 {dimension_numbers = #tpu.dot_dimension_numbers<[1], [0], [0], [1], [0, 0, 1, 1], [], []>} : vector<2x32xf32>, vector<32x128xf32>, vector<2x128xf32> -> vector<2x128xf32>
    %365 = arith.addf %363, %364 : vector<2x128xf32>
    %366 = vector.broadcast %57 : vector<1x128xf32> to vector<2x128xf32>
    %367 = arith.addf %365, %366 : vector<2x128xf32>
    %368 = vector.broadcast %61 : vector<1x128xf32> to vector<2x128xf32>
    %369 = arith.mulf %367, %368 : vector<2x128xf32>
    %370 = math.tanh %369 : vector<2x128xf32>
    %371 = vector.broadcast %61 : vector<1x128xf32> to vector<2x128xf32>
    %372 = arith.mulf %370, %371 : vector<2x128xf32>
    %373 = vector.broadcast %62 : vector<1x128xf32> to vector<2x128xf32>
    %374 = arith.addf %372, %373 : vector<2x128xf32>
    %375 = vector.extract_strided_slice %374 {offsets = [0, 0], sizes = [2, 32], strides = [1, 1]} : vector<2x128xf32> to vector<2x32xf32>
    %376 = vector.extract_strided_slice %374 {offsets = [0, 32], sizes = [2, 32], strides = [1, 1]} : vector<2x128xf32> to vector<2x32xf32>
    %377 = vector.extract_strided_slice %374 {offsets = [0, 64], sizes = [2, 32], strides = [1, 1]} : vector<2x128xf32> to vector<2x32xf32>
    %378 = vector.extract_strided_slice %374 {offsets = [0, 96], sizes = [2, 32], strides = [1, 1]} : vector<2x128xf32> to vector<2x32xf32>
    %379 = arith.mulf %376, %341 : vector<2x32xf32>
    %380 = arith.mulf %375, %377 : vector<2x32xf32>
    %381 = arith.addf %379, %380 : vector<2x32xf32>
    %382 = math.tanh %381 : vector<2x32xf32>
    %383 = arith.mulf %378, %382 : vector<2x32xf32>
    %c0_80 = arith.constant 0 : index
    %c0_81 = arith.constant 0 : index
    %c0_82 = arith.constant 0 : index
    %384 = vector.load %arg9[%c0_80, %c0_81, %c0_82] : memref<2x1x32xf32, #tpu.memory_space<vmem>>, vector<1x1x32xf32>
    %385 = vector.shape_cast %384 : vector<1x1x32xf32> to vector<1x32xf32>
    %386 = vector.broadcast %385 : vector<1x32xf32> to vector<2x32xf32>
    %387 = arith.mulf %362, %386 : vector<2x32xf32>
    %c1_83 = arith.constant 1 : index
    %c0_84 = arith.constant 0 : index
    %c0_85 = arith.constant 0 : index
    %388 = vector.load %arg9[%c1_83, %c0_84, %c0_85] : memref<2x1x32xf32, #tpu.memory_space<vmem>>, vector<1x1x32xf32>
    %389 = vector.shape_cast %388 : vector<1x1x32xf32> to vector<1x32xf32>
    %390 = vector.broadcast %389 : vector<1x32xf32> to vector<2x32xf32>
    %391 = arith.mulf %383, %390 : vector<2x32xf32>
    %392 = arith.addf %387, %391 : vector<2x32xf32>
    %cst_86 = arith.constant dense<0.000000e+00> : vector<2xf32>
    %393 = vector.multi_reduction <add>, %392, %cst_86 [1] : vector<2x32xf32> to vector<2xf32>
    %394 = vector.shape_cast %393 : vector<2xf32> to vector<2x1xf32>
    %c0_87 = arith.constant 0 : index
    %c0_88 = arith.constant 0 : index
    %395 = vector.load %arg10[%c0_87, %c0_88] : memref<1x1xf32, #tpu.memory_space<vmem>>, vector<1x1xf32>
    %396 = vector.broadcast %395 : vector<1x1xf32> to vector<2x1xf32>
    %397 = arith.addf %394, %396 : vector<2x1xf32>
    %c0_89 = arith.constant 0 : index
    %c0_90 = arith.constant 0 : index
    %398 = vector.load %arg11[%c0_89, %c0_90] : memref<2x1xf32, #tpu.memory_space<vmem>>, vector<2x1xf32>
    tpu.vector_store %arg11[%c0_89, %c0_90], %397 {strides = array<i32>} : memref<2x1xf32, #tpu.memory_space<vmem>>, vector<2x1xf32>,
    return
  }
  func.func @transform_0(%arg0: i32, %arg1: memref<2x8xi32, #tpu.memory_space<smem>>) -> (i32, i32) {
    %c0_i32 = arith.constant 0 : i32
    %c0_i32_0 = arith.constant 0 : i32
    %c0_i32_1 = arith.constant 0 : i32
    return %c0_i32, %c0_i32_0 : i32, i32
  }
  func.func @transform_1(%arg0: i32, %arg1: memref<2x8xi32, #tpu.memory_space<smem>>) -> (i32, i32) {
    %c0_i32 = arith.constant 0 : i32
    %c0_i32_0 = arith.constant 0 : i32
    %c0_i32_1 = arith.constant 0 : i32
    return %c0_i32, %c0_i32_0 : i32, i32
  }
  func.func @transform_2(%arg0: i32, %arg1: memref<2x8xi32, #tpu.memory_space<smem>>) -> (i32, i32) {
    %c0_i32 = arith.constant 0 : i32
    %c0_i32_0 = arith.constant 0 : i32
    %c0_i32_1 = arith.constant 0 : i32
    return %c0_i32, %c0_i32_0 : i32, i32
  }
  func.func @transform_3(%arg0: i32, %arg1: memref<2x8xi32, #tpu.memory_space<smem>>) -> (i32, i32) {
    %c0_i32 = arith.constant 0 : i32
    %c0_i32_0 = arith.constant 0 : i32
    %c0_i32_1 = arith.constant 0 : i32
    return %c0_i32, %c0_i32_0 : i32, i32
  }
  func.func @transform_4(%arg0: i32, %arg1: memref<2x8xi32, #tpu.memory_space<smem>>) -> (i32, i32) {
    %c0_i32 = arith.constant 0 : i32
    %c0_i32_0 = arith.constant 0 : i32
    %c0_i32_1 = arith.constant 0 : i32
    return %c0_i32, %c0_i32_0 : i32, i32
  }
  func.func @transform_5(%arg0: i32, %arg1: memref<2x8xi32, #tpu.memory_space<smem>>) -> (i32, i32) {
    %c0_i32 = arith.constant 0 : i32
    %c0_i32_0 = arith.constant 0 : i32
    %c0_i32_1 = arith.constant 0 : i32
    return %c0_i32, %c0_i32_0 : i32, i32
  }
  func.func @transform_6(%arg0: i32, %arg1: memref<2x8xi32, #tpu.memory_space<smem>>) -> (i32, i32) {
    %c0_i32 = arith.constant 0 : i32
    %c0_i32_0 = arith.constant 0 : i32
    %c0_i32_1 = arith.constant 0 : i32
    return %c0_i32, %c0_i32_0 : i32, i32
  }
  func.func @transform_7(%arg0: i32, %arg1: memref<2x8xi32, #tpu.memory_space<smem>>) -> (i32, i32, i32) {
    %c0_i32 = arith.constant 0 : i32
    %c0_i32_0 = arith.constant 0 : i32
    %c0_i32_1 = arith.constant 0 : i32
    %c0_i32_2 = arith.constant 0 : i32
    return %c0_i32, %c0_i32_0, %c0_i32_1 : i32, i32, i32
  }
  func.func @transform_8(%arg0: i32, %arg1: memref<2x8xi32, #tpu.memory_space<smem>>) -> (i32, i32) {
    %c0_i32 = arith.constant 0 : i32
    %c0_i32_0 = arith.constant 0 : i32
    %c0_i32_1 = arith.constant 0 : i32
    return %c0_i32, %c0_i32_0 : i32, i32
  }
  func.func @transform_9(%arg0: i32, %arg1: memref<2x8xi32, #tpu.memory_space<smem>>) -> (i32, i32) {
    %c0_i32 = arith.constant 0 : i32
    %c0_i32_0 = arith.constant 0 : i32
    %c0_i32_1 = arith.constant 0 : i32
    return %c0_i32, %c0_i32_0 : i32, i32
  }
}

</mosaic_0001>

<bundles_post_ra>
// kernel: tpu_custom_call.1
= control target key start
LH: loop header
LB: loop body
LE: loop exit
PB: predicated region body
PF: predicated region fallthrough
CT: control target
= control target key end

     0   :  { %s3074_s13 = smov [#allocation3]   ;;  %s3803_s0 = inlined_call_operand.hbm [shape: s32[2,8], index: 0, kind: input, shape index: {}]   ;;  %s3804_s1 = inlined_call_operand.vmem [shape: f32[50,32], index: 1, kind: input, shape index: {}]   ;;  %s3805_s2 = inlined_call_operand.vmem [shape: f32[32,128], index: 2, kind: input, shape index: {}]   ;;  %s3806_s3 = inlined_call_operand.vmem [shape: f32[32,128], index: 3, kind: input, shape index: {}]   ;;  %s3807_s4 = inlined_call_operand.vmem [shape: f32[1,128], index: 4, kind: input, shape index: {}]   ;;  %s3808_s5 = inlined_call_operand.vmem [shape: f32[32,128], index: 5, kind: input, shape index: {}]   ;;  %s3809_s6 = inlined_call_operand.hbm [shape: f32[32,128], index: 6, kind: input, shape index: {}]   ;;  %s3810_s7 = inlined_call_operand.vmem [shape: f32[1,128], index: 7, kind: input, shape index: {}]   ;;  %s3811_s8 = inlined_call_operand.vmem [shape: f32[2,1,32], index: 8, kind: input, shape index: {}]   ;;  %s3812_s10 = inlined_call_operand.vmem [shape: f32[2,1], index: 10, kind: output, shape index: {}]   ;;  %s3813_s9 = inlined_call_operand.<no memory space> [shape: f32[1,1], index: 9, kind: input, shape index: {}]  }
   0x1   :  { %16 = dma.hbm_to_smem %s3803_s0, 32, %s3074_s13, [#allocation2]  ;;  %v17_v0 = vstv %s3813_s9 }
   0x2   :  { %18 = vst [vmem:[#allocation4] sm:$0x1] %v17_v0 }
   0x3   :  { %3070 = dma.done.wait [#allocation2], 32 }
   0x4   :  { %3071 = vsyncadd [#allocation2], 4294967264 }
   0x5   :  { %20 = sfence }
   0x6   :  { %21 = vsyncpa [#allocation6], 0  ;;  %s3075_s18 = smov [#allocation5]  }
   0x7   :  { %s37_s19 = sshll.u32 %s3075_s18, 4  ;;  %s38_s19 = int_to_ptr.vmem [resolvable:$true] %s37_s19 }
   0x8   :  { %s3058_s20 = scalar_lea.vmem %s38_s19, 512  ;;  %p3063_p1 = scmp.lt.s32.totalorder %s38_s19, %s38_s19 }
   0x9   :  { %p3059_p0 = scmp.ne.s32.totalorder %s38_s19, %s3058_s20  ;;  %p3064_p2 = scmp.lt.s32.totalorder %s3058_s20, %s3058_s20 }
   0xb   :  { %p3065_p3 = por %p3064_p2, %p3063_p1 }
   0xd   :  { %p3066_p4 = pnand %p3065_p3, %p3059_p0 }
   0xf   :  { %3069 = shalt.err (!%p3066_p4)
}
  0x10   :  { %s3076_s0 = smov 128   ;;  %s3077_s21 = smov 8  }
  0x11   :  { %43 = dma.hbm_to_vmem [thread:$0]  %s3809_s6, 512, %s38_s19, [#allocation6], %s3076_s0, %s3076_s0, %s3077_s21  }
  0x12   :  { %3072 = dma.done.wait [#allocation6], 512  }
  0x13   :  { %3073 = vsyncadd [#allocation6], 4294966784  ;;  %v3078_v1 = vmov 0.0   ;;  %s53_s9 = sld [smem:[#allocation3]]  ;;  %vm3079_vm0 = vmmov 0   ;;  %v167_v2 = vld [vmem:[%s3805_s2 + $0x18] sm:$0xff]  ;;  %v350_v56 = vlaneseq }
  0x14   :  { %2691 = vmatprep.subr.mxu1 %v3078_v1  ;;  %s2509_s24 = sld [smem:[#allocation3 + $0x80]]  ;;  %2699 = vmatprep.mubr.msk.f32.mxu1 %vm3079_vm0, %v3078_v1  ;;  %v166_v3 = vld [vmem:[%s3805_s2 + $0x10] sm:$0xff]  ;;  %v3168_v4 = vld [vmem:[%s3806_s3 + $0x18] sm:$0xff]  ;;  %v165_v5 = vld [vmem:[%s3805_s2 + $0x8] sm:$0xff]  ;;  %vm143_vm1 = vcmask 1040384   ;;  %vm145_vm2 = vcmask 1041408  }
  0x15   :  { %s3149_s25 = sld [smem:[#allocation3 + $0x1]]  ;;  %2680 = vmatprep.subr.mxu0 %v167_v2  ;;  %2692 = vmatpush3.msra.mxu1 %v3168_v4  ;;  %v3182_v6 = vld [vmem:[%s3806_s3 + $0x10] sm:$0xff]  ;;  %vm147_vm3 = vcmask 1042432   ;;  %v3197_v9 = vld [vmem:[%s3806_s3 + $0x8] sm:$0xff]  ;;  %v164_v10 = vld [vmem:[%s3805_s2] sm:$0xff]  ;;  %vm149_vm4 = vcmask 1043456  }
  0x16   :  { %s3153_s26 = sld [smem:[#allocation3 + $0x81]]  ;;  %2681 = vmatpush3.msra.mxu0 %v167_v2  ;;  %2693 = vmatprep.subr.mxu1 %v3078_v1  ;;  %v3219_v15 = vld [vmem:[%s3806_s3] sm:$0xff]  ;;  %vm151_vm5 = vcmask 1044480   ;;  %vm153_vm6 = vcmask 1045504   ;;  %vm155_vm7 = vcmask 1046528   ;;  %vm175_vm8 = vcmask 261120  }
  0x17   :  { %s3155_s27 = sld [smem:[#allocation3 + $0x2]]  ;;  %2682 = vmatprep.subr.mxu0 %v166_v3  ;;  %2694 = vmatpush3.msra.mxu1 %v3182_v6  ;;  %vm270_vm9 = vcmask 523264   ;;  %v351_v57 = vshrl.u32 %v350_v56, 7  ;;  %v3080_v58 = vmov 1.0   ;;  %vm272_vm10 = vcmask 785408  }
  0x18   :  { %s3157_s28 = sld [smem:[#allocation3 + $0x82]]  ;;  %2683 = vmatpush3.msra.mxu0 %v166_v3  ;;  %2695 = vmatprep.subr.mxu1 %v3078_v1  ;;  %v271_v59 = vsel %vm270_vm9, 0.5, %v3080_v58  ;;  %v2524_v60 = vld [vmem:[%s3807_s4] ss:$0 sm:$0xff]  ;;  %s3081_s4 = smov 64   ;;  %vm2474_vm11 = vcmask 261126  }
  0x19   :  { %s54_s16 = scalar_lea.vmem %s3804_s1, %s53_s9  ;;  %s3173_s17 = sld [smem:[#allocation3 + $0x3]]  ;;  %2684 = vmatprep.subr.mxu0 %v165_v5  ;;  %2696 = vmatpush3.msra.mxu1 %v3197_v9  ;;  %v352_v61 = vsub.s32 0, %v351_v57  ;;  %v273_v63 = vsel %vm272_vm10, %v271_v59, 0.5  ;;  %vm2486_vm12 = vcmask 7174  }
  0x1a   :  { %s57_s23 = scalar_lea.vmem %s3804_s1, %s2509_s24  ;;  %s3187_s9 = sld [smem:[#allocation3 + $0x83]]  ;;  %v55_v7 = vld [vmem:[%s54_s16] sm:$0x1]  ;;  %2685 = vmatpush3.msra.mxu0 %v165_v5  ;;  %2697 = vmatprep.subr.mxu1 %v3078_v1 }
  0x1b   :  { %v58_v8 = vld [vmem:[%s57_s23] sm:$0x1]  ;;  %s60_s30 = scalar_lea.vmem %s3804_s1, %s3149_s25  ;;  %s3207_s25 = sld [smem:[#allocation3 + $0x4]]  ;;  %2686 = vmatprep.subr.mxu0 %v164_v10  ;;  %2698 = vmatpush3.msra.mxu1 %v3219_v15  ;;  %v3302_v5 = vrot.slane %v273_v63, %v352_v61 }
  0x1c   :  { %v61_v11 = vld [vmem:[%s60_s30] sm:$0x1]  ;;  %s63_s16 = scalar_lea.vmem %s3804_s1, %s3153_s26  ;;  %v102_v12 = vrot.slane %v58_v8, 7  ;;  %s3214_s0 = sld [smem:[#allocation3 + $0x84]]  ;;  %2687 = vmatpush3.msra.mxu0 %v164_v10  ;;  %2700 = vmatmul.mubr.f32.vlgmr.msra.gmra.mxu1 %v3078_v1  ;;  %v274_v10 = vsel %vm270_vm9, 0.5, %v3078_v1 }
  0x1d   :  { %v64_v13 = vld [vmem:[%s63_s16] sm:$0x1]  ;;  %s66_s20 = scalar_lea.vmem %s3804_s1, %s3155_s27  ;;  %v105_v14 = vrot.slane %v61_v11, 6  ;;  %s3227_s27 = sld [smem:[#allocation3 + $0x5]]  ;;  %2702 = vmatprep.subr.mxu0 %v3078_v1  ;;  %2713 = vmatprep.subr.mxu1 %v3078_v1  ;;  %v275_v11 = vsel %vm272_vm10, %v274_v10, 0.5 }
  0x1e   :  { %v67_v16 = vld [vmem:[%s66_s20] sm:$0x1]  ;;  %s69_s23 = scalar_lea.vmem %s3804_s1, %s3157_s28  ;;  %v108_v17 = vrot.slane %v64_v13, 5  ;;  %v144_v18 = vsel %vm143_vm1, %v55_v7, %v102_v12  ;;  %s3234_s28 = sld [smem:[#allocation3 + $0x85]]  ;;  %2721 = vmatprep.mubr.msk.f32.mxu1 %vm3079_vm0, %v3078_v1  ;;  %v3308_v12 = vrot.slane %v275_v11, %v352_v61 }
  0x1f   :  { %v70_v19 = vld [vmem:[%s69_s23] sm:$0x1]  ;;  %s72_s30 = scalar_lea.vmem %s3804_s1, %s3173_s17  ;;  %v111_v20 = vrot.slane %v67_v16, 4  ;;  %v146_v21 = vsel %vm145_vm2, %v144_v18, %v105_v14  ;;  %s3242_s17 = sld [smem:[#allocation3 + $0x6]] }
  0x20   :  { %v73_v22 = vld [vmem:[%s72_s30] sm:$0x1]  ;;  %s75_s24 = scalar_lea.vmem %s3804_s1, %s3187_s9  ;;  %v114_v23 = vrot.slane %v70_v19, 3  ;;  %v148_v24 = vsel %vm147_vm3, %v146_v21, %v108_v17  ;;  %s2521_s13 = sld [smem:[#allocation3 + $0x86]] }
  0x21   :  { %v76_v25 = vld [vmem:[%s75_s24] sm:$0x1]  ;;  %v117_v26 = vrot.slane %v73_v22, 2  ;;  %v150_v27 = vsel %vm149_vm4, %v148_v24, %v111_v20  ;;  %s78_s15 = scalar_lea.vmem %s3804_s1, %s3207_s25  ;;  %s2522_s16 = sld [smem:[#allocation3 + $0x7]]  ;;  %v3325_v24 = vld [vmem:[%s3808_s5 + $0x18] sm:$0xff] }
  0x22   :  { %v120_v28 = vrot.slane %v76_v25, 1  ;;  %v152_v29 = vsel %vm151_vm5, %v150_v27, %v114_v23  ;;  %s81_s20 = scalar_lea.vmem %s3804_s1, %s3214_s0  ;;  %s2523_s2 = sld [smem:[#allocation3 + $0x87]]  ;;  %v79_v32 = vld [vmem:[%s78_s15] sm:$0x1]  ;;  %v3319_v23 = vld [vmem:[#allocation5 + $0x10] sm:$0xff]  ;;  %2714 = vmatpush3.msra.mxu1 %v3325_v24  ;;  %v3341_v27 = vld [vmem:[%s3808_s5 + $0x8] sm:$0xff] }
  0x23   :  { %v154_v30 = vsel %vm153_vm6, %v152_v29, %v117_v26  ;;  %v82_v33 = vld [vmem:[%s81_s20] sm:$0x1]  ;;  %s84_s26 = scalar_lea.vmem %s3804_s1, %s3227_s27  ;;  %v3330_v25 = vld [vmem:[%s3808_s5 + $0x10] sm:$0xff]  ;;  %2715 = vmatprep.subr.mxu1 %v3078_v1 }
  0x24   :  { %v156_v31 = vsel %vm155_vm7, %v154_v30, %v120_v28  ;;  %v85_v34 = vld [vmem:[%s84_s26] sm:$0x1]  ;;  %s87_s6 = scalar_lea.vmem %s3804_s1, %s3234_s28  ;;  %v123_v35 = vrot.slane %v82_v33, 7  ;;  %v3333_v26 = vld [vmem:[#allocation5 + $0x8] sm:$0xff]  ;;  %v3344_v28 = vld [vmem:[#allocation5] sm:$0xff]  ;;  %2716 = vmatpush3.msra.mxu1 %v3330_v25 }
  0x25   :  { %2688 = vmatprep.mubr.msk.f32.mxu0 %vm175_vm8, %v156_v31  ;;  %v88_v36 = vld [vmem:[%s87_s6] sm:$0x1]  ;;  %s90_s30 = scalar_lea.vmem %s3804_s1, %s3242_s17  ;;  %v126_v37 = vrot.slane %v85_v34, 6  ;;  %2717 = vmatprep.subr.mxu1 %v3078_v1 }
  0x26   :  { %v91_v38 = vld [vmem:[%s90_s30] sm:$0x1]  ;;  %s93_s24 = scalar_lea.vmem %s3804_s1, %s2521_s13  ;;  %v129_v39 = vrot.slane %v88_v36, 5  ;;  %v157_v40 = vsel %vm143_vm1, %v79_v32, %v123_v35  ;;  %2718 = vmatpush3.msra.mxu1 %v3341_v27 }
  0x27   :  { %v94_v41 = vld [vmem:[%s93_s24] sm:$0x1]  ;;  %s96_s28 = scalar_lea.vmem %s3804_s1, %s2522_s16  ;;  %v132_v42 = vrot.slane %v91_v38, 4  ;;  %v158_v43 = vsel %vm145_vm2, %v157_v40, %v126_v37  ;;  %s3082_s16 = smov 32   ;;  %2719 = vmatprep.subr.mxu1 %v3078_v1 }
  0x28   :  { %v97_v44 = vld [vmem:[%s96_s28] sm:$0x1]  ;;  %s99_s15 = scalar_lea.vmem %s3804_s1, %s2523_s2  ;;  %v135_v45 = vrot.slane %v94_v41, 3  ;;  %v159_v46 = vsel %vm147_vm3, %v158_v43, %v129_v39 }
  0x29   :  { %v100_v47 = vld [vmem:[%s99_s15] sm:$0x1]  ;;  %v138_v48 = vrot.slane %v97_v44, 2  ;;  %v160_v49 = vsel %vm149_vm4, %v159_v46, %v132_v42 }
  0x2a   :  { %v141_v50 = vrot.slane %v100_v47, 1  ;;  %v161_v51 = vsel %vm151_vm5, %v160_v49, %v135_v45  ;;  %v3317_v22 = vld [vmem:[#allocation5 + $0x18] sm:$0xff] }
  0x2b   :  { %v162_v52 = vsel %vm153_vm6, %v161_v51, %v138_v48  ;;  %v3354_v29 = vld [vmem:[%s3808_s5] sm:$0xff] }
  0x2c   :  { %v163_v53 = vsel %vm155_vm7, %v162_v52, %v141_v50  ;;  %2720 = vmatpush3.msra.mxu1 %v3354_v29  ;;  %v3399_v36 = vld [vmem:[%s3810_s7] ss:$0 sm:$0xff] }
  0x2d   :  { %2689 = vmatmul.mubr.msk.f32.vlgmr.msra.gmra.mxu0 %vm175_vm8, %v163_v53  ;;  %2735 = vmatprep.subr.mxu1 %v3078_v1 }
  0x2e   :  { %2710 = vmatprep.mubr.msk.f32.mxu0 %vm3079_vm0, %v3078_v1  ;;  %2703 = vmatpush3.msra.mxu0 %v3317_v22 }
  0x2f   :  { %2704 = vmatprep.subr.mxu0 %v3078_v1 }
  0x30   :  { %2705 = vmatpush3.msra.mxu0 %v3319_v23 }
  0x31   :  { %2706 = vmatprep.subr.mxu0 %v3078_v1 }
  0x32   :  { %2707 = vmatpush3.msra.mxu0 %v3333_v26 }
  0x33   :  { %2708 = vmatprep.subr.mxu0 %v3078_v1 }
  0x34   :  { %2709 = vmatpush3.msra.mxu0 %v3344_v28 }
  0x35   :  { %2711 = vmatmul.mubr.f32.vlgmr.msra.gmra.mxu0 %v3078_v1  ;;  %2724 = vmatprep.subr.mxu0 %v3078_v1 }
  0x36   :  { %2725 = vmatpush3.msra.mxu0 %v3168_v4  ;;  %2732 = vmatprep.mubr.msk.f32.mxu0 %vm3079_vm0, %v3078_v1 }
  0x37   :  { %2726 = vmatprep.subr.mxu0 %v3078_v1 }
  0x38   :  { %2727 = vmatpush3.msra.mxu0 %v3182_v6 }
  0x39   :  { %2728 = vmatprep.subr.mxu0 %v3078_v1 }
  0x3a   :  { %2729 = vmatpush3.msra.mxu0 %v3197_v9 }
  0x3b   :  { %2730 = vmatprep.subr.mxu0 %v3078_v1 }
  0x3c   :  { %2731 = vmatpush3.msra.mxu0 %v3219_v15 }
  0x3d   :  { %2746 = vmatprep.subr.mxu0 %v3078_v1 }
  0xdc   :  { %v345_v54 = vpop.f32.mrf.mxu1 }
  0xde   :  { %v2701_v55 = vpop.f32.mrf.mxu1 }
  0xed   :  { %v2690_v62 = vpop.f32.mrf.mxu0 }
  0xee   :  { %v3298_v0 = vadd.f32 %v2690_v62, %v2524_v60 }
  0xef   :  { %v248_v2 = vpop.f32.mrf.mxu0 }
  0xf0   :  { %v3300_v3 = vadd.f32 %v2524_v60, %v248_v2 }
  0xf2   :  { %v349_v7 = vadd.f32 %v345_v54, %v3300_v3 }
  0xf4   :  { %v354_v8 = vmul.f32 %v3302_v5, %v349_v7 }
  0xf5   :  { %v445_v33 = vpop.f32.mrf.mxu0 }
  0xf6   :  { %2965 = vtanh.f32 %v354_v8 }
  0xf7   :  { %v2712_v34 = vpop.f32.mrf.mxu0 }
 0x103   :  { %v2966_v13 = vpop.eup %2965 }
 0x104   :  { %v356_v14 = vmul.f32 %v2966_v13, %v3302_v5 }
 0x106   :  { %v361_v16 = vadd.f32 %v3308_v12, %v356_v14 }
 0x108   :  { %364 = vrot.lane.b32.xlu0 %v361_v16, %s3081_s4  ;;  %v362_v19 = vmul.f32 0.0, %v361_v16 }
 0x17a   :  { %v365_v17 = vpop.permute.xlu0 %364 }
 0x17b   :  { %v367_v18 = vmul.f32 %v365_v17, %v361_v16 }
 0x17d   :  { %369 = vrot.lane.b32.xlu0 %v367_v18, %s3082_s16 }
 0x1ef   :  { %v370_v20 = vpop.permute.xlu0 %369 }
 0x1f0   :  { %v3314_v21 = vadd.f32 %v370_v20, %v362_v19 }
 0x1f2   :  { %2967 = vtanh.f32 %v3314_v21  ;;  %v631_v57 = vrot.slane %v3314_v21, 6 }
 0x1ff   :  { %v2968_v30 = vpop.eup %2967 }
 0x200   :  { %375 = vrot.lane.b32.xlu1 %v2968_v30, %s3081_s4 }
 0x272   :  { %v376_v31 = vpop.permute.xlu1 %375 }
 0x273   :  { %v378_v32 = vmul.f32 %v376_v31, %v361_v16 }
 0x275   :  { %450 = vrot.lane.b32.xlu1 %v378_v32, %s3082_s16 }
 0x2e7   :  { %v451_v35 = vpop.permute.xlu1 %450 }
 0x2e8   :  { %2722 = vmatmul.mubr.msk.f32.vlgmr.msra.gmra.mxu1 %vm175_vm8, %v451_v35  ;;  %2733 = vmatmul.mubr.msk.f32.vlgmr.msra.gmra.mxu0 %vm175_vm8, %v451_v35 }
 0x2e9   :  { %2736 = vmatpush3.msra.mxu1 %v3317_v22  ;;  %2747 = vmatpush3.msra.mxu0 %v3325_v24 }
 0x2ea   :  { %2737 = vmatprep.subr.mxu1 %v3078_v1  ;;  %2748 = vmatprep.subr.mxu0 %v3078_v1 }
 0x2eb   :  { %2738 = vmatpush3.msra.mxu1 %v3319_v23  ;;  %2749 = vmatpush3.msra.mxu0 %v3330_v25 }
 0x2ec   :  { %2739 = vmatprep.subr.mxu1 %v3078_v1  ;;  %2750 = vmatprep.subr.mxu0 %v3078_v1 }
 0x2ed   :  { %2740 = vmatpush3.msra.mxu1 %v3333_v26  ;;  %2743 = vmatprep.mubr.msk.f32.mxu1 %vm3079_vm0, %v3078_v1 }
 0x2ee   :  { %2741 = vmatprep.subr.mxu1 %v3078_v1  ;;  %2751 = vmatpush3.msra.mxu0 %v3341_v27 }
 0x2ef   :  { %2742 = vmatpush3.msra.mxu1 %v3344_v28  ;;  %2752 = vmatprep.subr.mxu0 %v3078_v1 }
 0x2f0   :  { %2757 = vmatprep.subr.mxu1 %v3078_v1  ;;  %2753 = vmatpush3.msra.mxu0 %v3354_v29 }
 0x2f1   :  { %2754 = vmatprep.mubr.msk.f32.mxu0 %vm3079_vm0, %v3078_v1  ;;  %2768 = vmatprep.subr.mxu0 %v3078_v1 }
 0x3a8   :  { %v520_v37 = vpop.f32.mrf.mxu1  ;;  %v618_v38 = vpop.f32.mrf.mxu0 }
 0x3a9   :  { %v521_v39 = vadd.f32 %v520_v37, %v445_v33  ;;  %v623_v40 = vrot.slane %v618_v38, 6 }
 0x3aa   :  { %v2723_v41 = vpop.f32.mrf.mxu1  ;;  %v2734_v42 = vpop.f32.mrf.mxu0 }
 0x3ab   :  { %v530_v43 = vadd.f32 %v3399_v36, %v521_v39  ;;  %v625_v44 = vadd.f32 %v623_v40, %v3300_v3 }
 0x3ad   :  { %v531_v45 = vmul.f32 %v530_v43, %v3302_v5  ;;  %v626_v46 = vmul.f32 %v625_v44, %v3302_v5 }
 0x3af   :  { %2969 = vtanh.f32 %v531_v45 }
 0x3b0   :  { %2971 = vtanh.f32 %v626_v46 }
 0x3bc   :  { %v2970_v47 = vpop.eup %2969 }
 0x3bd   :  { %v2972_v48 = vpop.eup %2971  ;;  %v533_v49 = vmul.f32 %v2970_v47, %v3302_v5 }
 0x3be   :  { %v628_v50 = vmul.f32 %v2972_v48, %v3302_v5 }
 0x3bf   :  { %v534_v51 = vadd.f32 %v533_v49, %v3308_v12 }
 0x3c0   :  { %v629_v52 = vadd.f32 %v628_v50, %v3308_v12 }
 0x3c1   :  { %537 = vrot.lane.b32.xlu0 %v534_v51, %s3081_s4  ;;  %v535_v58 = vmul.f32 0.0, %v534_v51 }
 0x3c2   :  { %635 = vrot.lane.b32.xlu1 %v629_v52, %s3081_s4  ;;  %v633_v59 = vmul.f32 %v631_v57, %v629_v52 }
 0x433   :  { %v538_v53 = vpop.permute.xlu0 %537 }
 0x434   :  { %v636_v54 = vpop.permute.xlu1 %635  ;;  %v540_v55 = vmul.f32 %v538_v53, %v534_v51 }
 0x435   :  { %v638_v56 = vmul.f32 %v636_v54, %v629_v52 }
 0x436   :  { %542 = vrot.lane.b32.xlu0 %v540_v55, %s3082_s16 }
 0x437   :  { %640 = vrot.lane.b32.xlu1 %v638_v56, %s3082_s16 }
 0x4a8   :  { %v543_v60 = vpop.permute.xlu0 %542 }
 0x4a9   :  { %v641_v61 = vpop.permute.xlu1 %640  ;;  %v3414_v62 = vadd.f32 %v543_v60, %v535_v58 }
 0x4aa   :  { %v3416_v63 = vadd.f32 %v641_v61, %v633_v59 }
 0x4ab   :  { %2973 = vtanh.f32 %v3414_v62 }
 0x4ac   :  { %2975 = vtanh.f32 %v3416_v63 }
 0x4b8   :  { %v2974_v2 = vpop.eup %2973 }
 0x4b9   :  { %v2976_v7 = vpop.eup %2975  ;;  %548 = vrot.lane.b32.xlu0 %v2974_v2, %s3081_s4 }
 0x4ba   :  { %646 = vrot.lane.b32.xlu1 %v2976_v7, %s3081_s4 }
 0x52b   :  { %v549_v8 = vpop.permute.xlu0 %548 }
 0x52c   :  { %v647_v10 = vpop.permute.xlu1 %646  ;;  %v551_v11 = vmul.f32 %v549_v8, %v534_v51 }
 0x52d   :  { %v649_v13 = vmul.f32 %v647_v10, %v629_v52  ;;  %v902_v52 = vrot.slane %v3416_v63, 6 }
 0x52e   :  { %651 = vrot.lane.b32.xlu0 %v551_v11, %s3082_s16 }
 0x52f   :  { %v726_v14 = vrot.slane %v649_v13, 2 }
 0x531   :  { %727 = vrot.lane.b32.xlu1 %v726_v14, %s3082_s16 }
 0x5a0   :  { %v652_v16 = vpop.permute.xlu0 %651 }
 0x5a1   :  { %2744 = vmatmul.mubr.msk.f32.vlgmr.msra.gmra.mxu1 %vm175_vm8, %v652_v16 }
 0x5a2   :  { %2758 = vmatpush3.msra.mxu1 %v3168_v4  ;;  %2765 = vmatprep.mubr.msk.f32.mxu1 %vm3079_vm0, %v3078_v1 }
 0x5a3   :  { %v728_v17 = vpop.permute.xlu1 %727  ;;  %2759 = vmatprep.subr.mxu1 %v3078_v1 }
 0x5a4   :  { %2755 = vmatmul.mubr.msk.f32.vlgmr.msra.gmra.mxu0 %vm175_vm8, %v728_v17  ;;  %2760 = vmatpush3.msra.mxu1 %v3182_v6 }
 0x5a5   :  { %2761 = vmatprep.subr.mxu1 %v3078_v1  ;;  %2769 = vmatpush3.msra.mxu0 %v3317_v22 }
 0x5a6   :  { %2762 = vmatpush3.msra.mxu1 %v3197_v9  ;;  %2770 = vmatprep.subr.mxu0 %v3078_v1 }
 0x5a7   :  { %2763 = vmatprep.subr.mxu1 %v3078_v1  ;;  %2771 = vmatpush3.msra.mxu0 %v3319_v23 }
 0x5a8   :  { %2764 = vmatpush3.msra.mxu1 %v3219_v15  ;;  %2772 = vmatprep.subr.mxu0 %v3078_v1 }
 0x5a9   :  { %2766 = vmatmul.mubr.msk.f32.vlgmr.msra.gmra.mxu1 %vm175_vm8, %v728_v17  ;;  %2773 = vmatpush3.msra.mxu0 %v3333_v26 }
 0x5aa   :  { %2774 = vmatprep.subr.mxu0 %v3078_v1  ;;  %2776 = vmatprep.mubr.msk.f32.mxu0 %vm3079_vm0, %v3078_v1 }
 0x5ab   :  { %2775 = vmatpush3.msra.mxu0 %v3344_v28  ;;  %2779 = vmatprep.subr.mxu1 %v3078_v1 }
 0x5ac   :  { %2790 = vmatprep.subr.mxu0 %v3078_v1  ;;  %2780 = vmatpush3.msra.mxu1 %v3325_v24 }
 0x5ad   :  { %2781 = vmatprep.subr.mxu1 %v3078_v1  ;;  %2787 = vmatprep.mubr.msk.f32.mxu1 %vm3079_vm0, %v3078_v1 }
 0x5ae   :  { %2782 = vmatpush3.msra.mxu1 %v3330_v25 }
 0x5af   :  { %2783 = vmatprep.subr.mxu1 %v3078_v1 }
 0x5b0   :  { %2784 = vmatpush3.msra.mxu1 %v3341_v27 }
 0x5b1   :  { %2785 = vmatprep.subr.mxu1 %v3078_v1 }
 0x5b2   :  { %2786 = vmatpush3.msra.mxu1 %v3354_v29 }
 0x5b3   :  { %2801 = vmatprep.subr.mxu1 %v3078_v1 }
 0x661   :  { %v721_v18 = vpop.f32.mrf.mxu1 }
 0x663   :  { %v2745_v19 = vpop.f32.mrf.mxu1 }
 0x664   :  { %v797_v20 = vpop.f32.mrf.mxu0 }
 0x665   :  { %v798_v21 = vadd.f32 %v797_v20, %v721_v18 }
 0x666   :  { %v2756_v30 = vpop.f32.mrf.mxu0 }
 0x667   :  { %v801_v31 = vadd.f32 %v3399_v36, %v798_v21 }
 0x669   :  { %v802_v32 = vmul.f32 %v801_v31, %v3302_v5  ;;  %v889_v33 = vpop.f32.mrf.mxu1 }
 0x66a   :  { %v894_v34 = vrot.slane %v889_v33, 4 }
 0x66b   :  { %2977 = vtanh.f32 %v802_v32  ;;  %v2767_v35 = vpop.f32.mrf.mxu1 }
 0x66c   :  { %v896_v37 = vadd.f32 %v894_v34, %v3300_v3 }
 0x66e   :  { %v897_v38 = vmul.f32 %v896_v37, %v3302_v5 }
 0x670   :  { %2979 = vtanh.f32 %v897_v38 }
 0x678   :  { %v2978_v39 = vpop.eup %2977 }
 0x679   :  { %v804_v40 = vmul.f32 %v2978_v39, %v3302_v5 }
 0x67b   :  { %v805_v41 = vadd.f32 %v804_v40, %v3308_v12 }
 0x67d   :  { %v2980_v42 = vpop.eup %2979  ;;  %808 = vrot.lane.b32.xlu0 %v805_v41, %s3081_s4  ;;  %v806_v49 = vmul.f32 %v805_v41, %v3414_v62 }
 0x67e   :  { %v899_v43 = vmul.f32 %v2980_v42, %v3302_v5 }
 0x680   :  { %v900_v44 = vadd.f32 %v899_v43, %v3308_v12 }
 0x682   :  { %906 = vrot.lane.b32.xlu1 %v900_v44, %s3081_s4  ;;  %v904_v53 = vmul.f32 %v902_v52, %v900_v44 }
 0x6ef   :  { %v809_v45 = vpop.permute.xlu0 %808 }
 0x6f0   :  { %v811_v46 = vmul.f32 %v809_v45, %v805_v41 }
 0x6f2   :  { %813 = vrot.lane.b32.xlu0 %v811_v46, %s3082_s16 }
 0x6f4   :  { %v907_v47 = vpop.permute.xlu1 %906 }
 0x6f5   :  { %v909_v48 = vmul.f32 %v907_v47, %v900_v44 }
 0x6f7   :  { %911 = vrot.lane.b32.xlu1 %v909_v48, %s3082_s16 }
 0x764   :  { %v814_v50 = vpop.permute.xlu0 %813 }
 0x765   :  { %v3470_v51 = vadd.f32 %v814_v50, %v806_v49 }
 0x767   :  { %2981 = vtanh.f32 %v3470_v51 }
 0x769   :  { %v912_v54 = vpop.permute.xlu1 %911 }
 0x76a   :  { %v3474_v55 = vadd.f32 %v912_v54, %v904_v53 }
 0x76c   :  { %2983 = vtanh.f32 %v3474_v55  ;;  %v1173_v40 = vrot.slane %v3474_v55, 6 }
 0x774   :  { %v2982_v56 = vpop.eup %2981 }
 0x775   :  { %819 = vrot.lane.b32.xlu0 %v2982_v56, %s3081_s4 }
 0x779   :  { %v2984_v57 = vpop.eup %2983 }
 0x77a   :  { %917 = vrot.lane.b32.xlu1 %v2984_v57, %s3081_s4 }
 0x7e7   :  { %v820_v58 = vpop.permute.xlu0 %819 }
 0x7e8   :  { %v822_v59 = vmul.f32 %v820_v58, %v805_v41 }
 0x7ea   :  { %922 = vrot.lane.b32.xlu0 %v822_v59, %s3082_s16 }
 0x7ec   :  { %v918_v60 = vpop.permute.xlu1 %917 }
 0x7ed   :  { %v920_v61 = vmul.f32 %v918_v60, %v900_v44 }
 0x7ef   :  { %v997_v62 = vrot.slane %v920_v61, 4 }
 0x7f1   :  { %998 = vrot.lane.b32.xlu1 %v997_v62, %s3082_s16 }
 0x85c   :  { %v923_v63 = vpop.permute.xlu0 %922 }
 0x85d   :  { %2777 = vmatmul.mubr.msk.f32.vlgmr.msra.gmra.mxu0 %vm175_vm8, %v923_v63 }
 0x85e   :  { %2791 = vmatpush3.msra.mxu0 %v3168_v4  ;;  %2798 = vmatprep.mubr.msk.f32.mxu0 %vm3079_vm0, %v3078_v1 }
 0x85f   :  { %2792 = vmatprep.subr.mxu0 %v3078_v1 }
 0x860   :  { %2793 = vmatpush3.msra.mxu0 %v3182_v6 }
 0x861   :  { %2794 = vmatprep.subr.mxu0 %v3078_v1 }
 0x862   :  { %2795 = vmatpush3.msra.mxu0 %v3197_v9 }
 0x863   :  { %2796 = vmatprep.subr.mxu0 %v3078_v1  ;;  %v999_v2 = vpop.permute.xlu1 %998 }
 0x864   :  { %2797 = vmatpush3.msra.mxu0 %v3219_v15  ;;  %2788 = vmatmul.mubr.msk.f32.vlgmr.msra.gmra.mxu1 %vm175_vm8, %v999_v2 }
 0x865   :  { %2799 = vmatmul.mubr.msk.f32.vlgmr.msra.gmra.mxu0 %vm175_vm8, %v999_v2  ;;  %2802 = vmatpush3.msra.mxu1 %v3317_v22 }
 0x866   :  { %2803 = vmatprep.subr.mxu1 %v3078_v1  ;;  %2812 = vmatprep.subr.mxu0 %v3078_v1 }
 0x867   :  { %2804 = vmatpush3.msra.mxu1 %v3319_v23  ;;  %2813 = vmatpush3.msra.mxu0 %v3325_v24 }
 0x868   :  { %2805 = vmatprep.subr.mxu1 %v3078_v1  ;;  %2814 = vmatprep.subr.mxu0 %v3078_v1 }
 0x869   :  { %2806 = vmatpush3.msra.mxu1 %v3333_v26  ;;  %2815 = vmatpush3.msra.mxu0 %v3330_v25 }
 0x86a   :  { %2807 = vmatprep.subr.mxu1 %v3078_v1  ;;  %2816 = vmatprep.subr.mxu0 %v3078_v1 }
 0x86b   :  { %2808 = vmatpush3.msra.mxu1 %v3344_v28  ;;  %2809 = vmatprep.mubr.msk.f32.mxu1 %vm3079_vm0, %v3078_v1 }
 0x86c   :  { %2817 = vmatpush3.msra.mxu0 %v3341_v27  ;;  %2823 = vmatprep.subr.mxu1 %v3078_v1 }
 0x86d   :  { %2818 = vmatprep.subr.mxu0 %v3078_v1  ;;  %2820 = vmatprep.mubr.msk.f32.mxu0 %vm3079_vm0, %v3078_v1 }
 0x86e   :  { %2819 = vmatpush3.msra.mxu0 %v3354_v29 }
 0x86f   :  { %2834 = vmatprep.subr.mxu0 %v3078_v1 }
 0x91d   :  { %v992_v7 = vpop.f32.mrf.mxu0 }
 0x91f   :  { %v2778_v8 = vpop.f32.mrf.mxu0 }
 0x924   :  { %v1068_v10 = vpop.f32.mrf.mxu1 }
 0x925   :  { %v1069_v11 = vadd.f32 %v1068_v10, %v992_v7  ;;  %v1160_v13 = vpop.f32.mrf.mxu0 }
 0x926   :  { %v1165_v14 = vrot.slane %v1160_v13, 2  ;;  %v2789_v16 = vpop.f32.mrf.mxu1 }
 0x927   :  { %v1072_v17 = vadd.f32 %v3399_v36, %v1069_v11  ;;  %v2800_v18 = vpop.f32.mrf.mxu0 }
 0x928   :  { %v1167_v19 = vadd.f32 %v1165_v14, %v3300_v3 }
 0x929   :  { %v1073_v20 = vmul.f32 %v1072_v17, %v3302_v5 }
 0x92a   :  { %v1168_v21 = vmul.f32 %v1167_v19, %v3302_v5 }
 0x92b   :  { %2985 = vtanh.f32 %v1073_v20 }
 0x92c   :  { %2987 = vtanh.f32 %v1168_v21 }
 0x938   :  { %v2986_v30 = vpop.eup %2985 }
 0x939   :  { %v2988_v31 = vpop.eup %2987  ;;  %v1075_v32 = vmul.f32 %v2986_v30, %v3302_v5 }
 0x93a   :  { %v1170_v33 = vmul.f32 %v2988_v31, %v3302_v5 }
 0x93b   :  { %v1076_v34 = vadd.f32 %v1075_v32, %v3308_v12 }
 0x93c   :  { %v1171_v35 = vadd.f32 %v1170_v33, %v3308_v12 }
 0x93d   :  { %1079 = vrot.lane.b32.xlu1 %v1076_v34, %s3081_s4  ;;  %v1077_v41 = vmul.f32 %v1076_v34, %v3470_v51 }
 0x93e   :  { %1177 = vrot.lane.b32.xlu0 %v1171_v35, %s3081_s4  ;;  %v1175_v42 = vmul.f32 %v1173_v40, %v1171_v35 }
 0x9af   :  { %v1080_v3 = vpop.permute.xlu1 %1079 }
 0x9b0   :  { %v1178_v37 = vpop.permute.xlu0 %1177  ;;  %v1082_v38 = vmul.f32 %v1080_v3, %v1076_v34 }
 0x9b1   :  { %v1180_v39 = vmul.f32 %v1178_v37, %v1171_v35 }
 0x9b2   :  { %1084 = vrot.lane.b32.xlu1 %v1082_v38, %s3082_s16 }
 0x9b3   :  { %1182 = vrot.lane.b32.xlu0 %v1180_v39, %s3082_s16 }
 0xa24   :  { %v1085_v43 = vpop.permute.xlu1 %1084 }
 0xa25   :  { %v1183_v44 = vpop.permute.xlu0 %1182  ;;  %v3528_v45 = vadd.f32 %v1085_v43, %v1077_v41 }
 0xa26   :  { %v3530_v46 = vadd.f32 %v1183_v44, %v1175_v42 }
 0xa27   :  { %2989 = vtanh.f32 %v3528_v45 }
 0xa28   :  { %2991 = vtanh.f32 %v3530_v46  ;;  %v1441_v31 = vrot.slane %v3530_v46, 6 }
 0xa34   :  { %v2990_v47 = vpop.eup %2989 }
 0xa35   :  { %v2992_v48 = vpop.eup %2991  ;;  %1090 = vrot.lane.b32.xlu1 %v2990_v47, %s3081_s4 }
 0xa36   :  { %1188 = vrot.lane.b32.xlu0 %v2992_v48, %s3081_s4 }
 0xaa7   :  { %v1091_v49 = vpop.permute.xlu1 %1090 }
 0xaa8   :  { %v1189_v50 = vpop.permute.xlu0 %1188  ;;  %v1093_v51 = vmul.f32 %v1091_v49, %v1076_v34 }
 0xaa9   :  { %v1191_v52 = vmul.f32 %v1189_v50, %v1171_v35 }
 0xaaa   :  { %1193 = vrot.lane.b32.xlu0 %v1093_v51, %s3082_s16 }
 0xaab   :  { %v1268_v53 = vrot.slane %v1191_v52, 6 }
 0xaad   :  { %1269 = vrot.lane.b32.xlu1 %v1268_v53, %s3082_s16 }
 0xb1c   :  { %v1194_v54 = vpop.permute.xlu0 %1193 }
 0xb1d   :  { %2810 = vmatmul.mubr.msk.f32.vlgmr.msra.gmra.mxu1 %vm175_vm8, %v1194_v54 }
 0xb1e   :  { %2824 = vmatpush3.msra.mxu1 %v3168_v4  ;;  %2831 = vmatprep.mubr.msk.f32.mxu1 %vm3079_vm0, %v3078_v1 }
 0xb1f   :  { %2825 = vmatprep.subr.mxu1 %v3078_v1  ;;  %v1270_v55 = vpop.permute.xlu1 %1269 }
 0xb20   :  { %2821 = vmatmul.mubr.msk.f32.vlgmr.msra.gmra.mxu0 %vm175_vm8, %v1270_v55  ;;  %2826 = vmatpush3.msra.mxu1 %v3182_v6 }
 0xb21   :  { %2827 = vmatprep.subr.mxu1 %v3078_v1  ;;  %2835 = vmatpush3.msra.mxu0 %v3317_v22 }
 0xb22   :  { %2828 = vmatpush3.msra.mxu1 %v3197_v9  ;;  %2836 = vmatprep.subr.mxu0 %v3078_v1 }
 0xb23   :  { %2829 = vmatprep.subr.mxu1 %v3078_v1  ;;  %2837 = vmatpush3.msra.mxu0 %v3319_v23 }
 0xb24   :  { %2830 = vmatpush3.msra.mxu1 %v3219_v15  ;;  %2838 = vmatprep.subr.mxu0 %v3078_v1 }
 0xb25   :  { %2832 = vmatmul.mubr.msk.f32.vlgmr.msra.gmra.mxu1 %vm175_vm8, %v1270_v55  ;;  %2845 = vmatprep.subr.mxu1 %v3078_v1 }
 0xb26   :  { %2839 = vmatpush3.msra.mxu0 %v3333_v26  ;;  %2846 = vmatpush3.msra.mxu1 %v3325_v24 }
 0xb27   :  { %2840 = vmatprep.subr.mxu0 %v3078_v1  ;;  %2847 = vmatprep.subr.mxu1 %v3078_v1 }
 0xb28   :  { %2841 = vmatpush3.msra.mxu0 %v3344_v28  ;;  %2848 = vmatpush3.msra.mxu1 %v3330_v25 }
 0xb29   :  { %2842 = vmatprep.mubr.msk.f32.mxu0 %vm3079_vm0, %v3078_v1  ;;  %2849 = vmatprep.subr.mxu1 %v3078_v1 }
 0xb2a   :  { %2856 = vmatprep.subr.mxu0 %v3078_v1  ;;  %2850 = vmatpush3.msra.mxu1 %v3341_v27 }
 0xb2b   :  { %2851 = vmatprep.subr.mxu1 %v3078_v1  ;;  %2853 = vmatprep.mubr.msk.f32.mxu1 %vm3079_vm0, %v3078_v1 }
 0xb2c   :  { %2852 = vmatpush3.msra.mxu1 %v3354_v29 }
 0xb2d   :  { %2867 = vmatprep.subr.mxu1 %v3078_v1 }
 0xbdd   :  { %v1263_v56 = vpop.f32.mrf.mxu1 }
 0xbdf   :  { %v2811_v57 = vpop.f32.mrf.mxu1 }
 0xbe0   :  { %v1339_v58 = vpop.f32.mrf.mxu0 }
 0xbe1   :  { %v1340_v59 = vadd.f32 %v1339_v58, %v1263_v56 }
 0xbe2   :  { %v2822_v60 = vpop.f32.mrf.mxu0 }
 0xbe3   :  { %v1343_v61 = vadd.f32 %v3399_v36, %v1340_v59 }
 0xbe5   :  { %v1344_v62 = vmul.f32 %v1343_v61, %v3302_v5  ;;  %v1431_v63 = vpop.f32.mrf.mxu1 }
 0xbe6   :  { %v1435_v2 = vadd.f32 %v1431_v63, %v3298_v0 }
 0xbe7   :  { %2993 = vtanh.f32 %v1344_v62  ;;  %v2833_v7 = vpop.f32.mrf.mxu1 }
 0xbe8   :  { %v1436_v8 = vmul.f32 %v1435_v2, %v3302_v5 }
 0xbea   :  { %2995 = vtanh.f32 %v1436_v8 }
 0xbf4   :  { %v2994_v10 = vpop.eup %2993 }
 0xbf5   :  { %v1346_v11 = vmul.f32 %v2994_v10, %v3302_v5 }
 0xbf7   :  { %v2996_v13 = vpop.eup %2995  ;;  %v1347_v14 = vadd.f32 %v1346_v11, %v3308_v12 }
 0xbf8   :  { %v1438_v16 = vmul.f32 %v2996_v13, %v3302_v5 }
 0xbf9   :  { %1350 = vrot.lane.b32.xlu0 %v1347_v14, %s3081_s4  ;;  %v1348_v30 = vmul.f32 %v1347_v14, %v3528_v45 }
 0xbfa   :  { %v1439_v17 = vadd.f32 %v1438_v16, %v3308_v12 }
 0xbfc   :  { %1445 = vrot.lane.b32.xlu1 %v1439_v17, %s3081_s4  ;;  %v1443_v34 = vmul.f32 %v1441_v31, %v1439_v17  ;;  %v3656_v31 = vld [vmem:[%s3806_s3 + $0x18] sm:$0xff] }
 0xc6b   :  { %v1351_v18 = vpop.permute.xlu0 %1350 }
 0xc6c   :  { %v1353_v19 = vmul.f32 %v1351_v18, %v1347_v14 }
 0xc6e   :  { %1355 = vrot.lane.b32.xlu0 %v1353_v19, %s3082_s16  ;;  %v1446_v20 = vpop.permute.xlu1 %1445 }
 0xc6f   :  { %v1448_v21 = vmul.f32 %v1446_v20, %v1439_v17 }
 0xc71   :  { %1450 = vrot.lane.b32.xlu1 %v1448_v21, %s3082_s16 }
 0xce0   :  { %v1356_v32 = vpop.permute.xlu0 %1355 }
 0xce1   :  { %v3585_v33 = vadd.f32 %v1356_v32, %v1348_v30  ;;  %v3665_v32 = vld [vmem:[%s3806_s3 + $0x10] sm:$0xff] }
 0xce3   :  { %2997 = vtanh.f32 %v3585_v33  ;;  %v1451_v35 = vpop.permute.xlu1 %1450 }
 0xce4   :  { %v3588_v3 = vadd.f32 %v1451_v35, %v1443_v34  ;;  %v3680_v35 = vld [vmem:[%s3806_s3] sm:$0xff] }
 0xce6   :  { %2999 = vtanh.f32 %v3588_v3  ;;  %v1711_v8 = vrot.slane %v3588_v3, 6 }
 0xcf0   :  { %v2998_v37 = vpop.eup %2997 }
 0xcf1   :  { %1361 = vrot.lane.b32.xlu0 %v2998_v37, %s3081_s4 }
 0xcf3   :  { %v3000_v38 = vpop.eup %2999 }
 0xcf4   :  { %1456 = vrot.lane.b32.xlu1 %v3000_v38, %s3081_s4 }
 0xd63   :  { %v1362_v39 = vpop.permute.xlu0 %1361 }
 0xd64   :  { %v1364_v40 = vmul.f32 %v1362_v39, %v1347_v14 }
 0xd66   :  { %1461 = vrot.lane.b32.xlu0 %v1364_v40, %s3082_s16  ;;  %v1457_v41 = vpop.permute.xlu1 %1456 }
 0xd67   :  { %v1459_v42 = vmul.f32 %v1457_v41, %v1439_v17 }
 0xd69   :  { %1536 = vrot.lane.b32.xlu1 %v1459_v42, %s3082_s16 }
 0xdd8   :  { %v1462_v43 = vpop.permute.xlu0 %1461 }
 0xdd9   :  { %2843 = vmatmul.mubr.msk.f32.vlgmr.msra.gmra.mxu0 %vm175_vm8, %v1462_v43 }
 0xdda   :  { %2857 = vmatpush3.msra.mxu0 %v3168_v4  ;;  %2864 = vmatprep.mubr.msk.f32.mxu0 %vm3079_vm0, %v3078_v1 }
 0xddb   :  { %2858 = vmatprep.subr.mxu0 %v3078_v1  ;;  %v1537_v44 = vpop.permute.xlu1 %1536 }
 0xddc   :  { %2859 = vmatpush3.msra.mxu0 %v3182_v6  ;;  %2854 = vmatmul.mubr.msk.f32.vlgmr.msra.gmra.mxu1 %vm175_vm8, %v1537_v44 }
 0xddd   :  { %2860 = vmatprep.subr.mxu0 %v3078_v1  ;;  %2868 = vmatpush3.msra.mxu1 %v3317_v22 }
 0xdde   :  { %2861 = vmatpush3.msra.mxu0 %v3197_v9  ;;  %2869 = vmatprep.subr.mxu1 %v3078_v1 }
 0xddf   :  { %2862 = vmatprep.subr.mxu0 %v3078_v1  ;;  %2870 = vmatpush3.msra.mxu1 %v3319_v23 }
 0xde0   :  { %2863 = vmatpush3.msra.mxu0 %v3219_v15  ;;  %2871 = vmatprep.subr.mxu1 %v3078_v1 }
 0xde1   :  { %2865 = vmatmul.mubr.msk.f32.vlgmr.msra.gmra.mxu0 %vm175_vm8, %v1537_v44  ;;  %2872 = vmatpush3.msra.mxu1 %v3333_v26 }
 0xde2   :  { %2873 = vmatprep.subr.mxu1 %v3078_v1  ;;  %2878 = vmatprep.subr.mxu0 %v3078_v1 }
 0xde3   :  { %2874 = vmatpush3.msra.mxu1 %v3344_v28  ;;  %2875 = vmatprep.mubr.msk.f32.mxu1 %vm3079_vm0, %v3078_v1 }
 0xde4   :  { %2879 = vmatpush3.msra.mxu0 %v3325_v24  ;;  %2889 = vmatprep.subr.mxu1 %v3078_v1 }
 0xde5   :  { %2880 = vmatprep.subr.mxu0 %v3078_v1  ;;  %2886 = vmatprep.mubr.msk.f32.mxu0 %vm3079_vm0, %v3078_v1 }
 0xde6   :  { %2881 = vmatpush3.msra.mxu0 %v3330_v25 }
 0xde7   :  { %2882 = vmatprep.subr.mxu0 %v3078_v1 }
 0xde8   :  { %2883 = vmatpush3.msra.mxu0 %v3341_v27 }
 0xde9   :  { %2884 = vmatprep.subr.mxu0 %v3078_v1 }
 0xdea   :  { %2885 = vmatpush3.msra.mxu0 %v3354_v29 }
 0xdeb   :  { %2900 = vmatprep.subr.mxu0 %v3078_v1 }
 0xe99   :  { %v1531_v4 = vpop.f32.mrf.mxu0 }
 0xe9b   :  { %v2844_v6 = vpop.f32.mrf.mxu0 }
 0xe9c   :  { %v1606_v9 = vpop.f32.mrf.mxu1 }
 0xe9d   :  { %v1607_v15 = vadd.f32 %v1606_v9, %v1531_v4 }
 0xe9e   :  { %v2855_v45 = vpop.f32.mrf.mxu1 }
 0xe9f   :  { %v1610_v46 = vadd.f32 %v3399_v36, %v1607_v15 }
 0xea1   :  { %v1611_v47 = vmul.f32 %v1610_v46, %v3302_v5  ;;  %v1698_v48 = vpop.f32.mrf.mxu0 }
 0xea2   :  { %v1703_v49 = vrot.slane %v1698_v48, 6 }
 0xea3   :  { %3001 = vtanh.f32 %v1611_v47  ;;  %v2866_v50 = vpop.f32.mrf.mxu0 }
 0xea4   :  { %v1705_v51 = vadd.f32 %v1703_v49, %v3298_v0 }
 0xea6   :  { %v1706_v52 = vmul.f32 %v1705_v51, %v3302_v5 }
 0xea8   :  { %3003 = vtanh.f32 %v1706_v52 }
 0xeb0   :  { %v3002_v53 = vpop.eup %3001 }
 0xeb1   :  { %v1613_v54 = vmul.f32 %v3002_v53, %v3302_v5 }
 0xeb3   :  { %v1614_v55 = vadd.f32 %v1613_v54, %v3308_v12 }
 0xeb5   :  { %v3004_v56 = vpop.eup %3003  ;;  %1617 = vrot.lane.b32.xlu0 %v1614_v55, %s3081_s4  ;;  %v1615_v63 = vmul.f32 %v1614_v55, %v3585_v33  ;;  %v3672_v33 = vld [vmem:[%s3806_s3 + $0x8] sm:$0xff] }
 0xeb6   :  { %v1708_v57 = vmul.f32 %v3004_v56, %v3302_v5 }
 0xeb8   :  { %v1709_v58 = vadd.f32 %v1708_v57, %v3308_v12 }
 0xeba   :  { %1715 = vrot.lane.b32.xlu1 %v1709_v58, %s3081_s4  ;;  %v1713_v10 = vmul.f32 %v1711_v8, %v1709_v58  ;;  %v3037_v8 = vld [vmem:[%s3808_s5 + $0x18] sm:$0xff] }
 0xf27   :  { %v1618_v59 = vpop.permute.xlu0 %1617 }
 0xf28   :  { %v1620_v60 = vmul.f32 %v1618_v59, %v1614_v55 }
 0xf2a   :  { %1622 = vrot.lane.b32.xlu0 %v1620_v60, %s3082_s16 }
 0xf2c   :  { %v1716_v61 = vpop.permute.xlu1 %1715 }
 0xf2d   :  { %v1718_v62 = vmul.f32 %v1716_v61, %v1709_v58 }
 0xf2f   :  { %1720 = vrot.lane.b32.xlu1 %v1718_v62, %s3082_s16  ;;  %v3033_v62 = vld [vmem:[#allocation5 + $0x18] sm:$0xff] }
 0xf9c   :  { %v1623_v2 = vpop.permute.xlu0 %1622 }
 0xf9d   :  { %v3641_v7 = vadd.f32 %v1623_v2, %v1615_v63  ;;  %v3034_v63 = vld [vmem:[#allocation5 + $0x10] sm:$0xff]  ;;  %v3035_v2 = vld [vmem:[#allocation5 + $0x8] sm:$0xff] }
 0xf9f   :  { %3005 = vtanh.f32 %v3641_v7 }
 0xfa1   :  { %v1721_v11 = vpop.permute.xlu1 %1720 }
 0xfa2   :  { %v3645_v13 = vadd.f32 %v1721_v11, %v1713_v10  ;;  %v3038_v10 = vld [vmem:[%s3808_s5 + $0x10] sm:$0xff]  ;;  %v3039_v11 = vld [vmem:[%s3808_s5 + $0x8] sm:$0xff] }
 0xfa4   :  { %3007 = vtanh.f32 %v3645_v13  ;;  %v1982_v46 = vrot.slane %v3645_v13, 6  ;;  %v3040_v13 = vld [vmem:[%s3808_s5] sm:$0xff] }
 0xfac   :  { %v3006_v14 = vpop.eup %3005 }
 0xfad   :  { %1628 = vrot.lane.b32.xlu0 %v3006_v14, %s3081_s4 }
 0xfb1   :  { %v3008_v16 = vpop.eup %3007 }
 0xfb2   :  { %1726 = vrot.lane.b32.xlu1 %v3008_v16, %s3081_s4 }
0x101f   :  { %v1629_v17 = vpop.permute.xlu0 %1628 }
0x1020   :  { %v1631_v18 = vmul.f32 %v1629_v17, %v1614_v55 }
0x1022   :  { %1731 = vrot.lane.b32.xlu0 %v1631_v18, %s3082_s16 }
0x1024   :  { %v1727_v19 = vpop.permute.xlu1 %1726 }
0x1025   :  { %v1729_v20 = vmul.f32 %v1727_v19, %v1709_v58 }
0x1027   :  { %v1806_v21 = vrot.slane %v1729_v20, 2 }
0x1029   :  { %1807 = vrot.lane.b32.xlu1 %v1806_v21, %s3082_s16 }
0x1094   :  { %v1732_v30 = vpop.permute.xlu0 %1731 }
0x1095   :  { %2876 = vmatmul.mubr.msk.f32.vlgmr.msra.gmra.mxu1 %vm175_vm8, %v1732_v30 }
0x1096   :  { %2890 = vmatpush3.msra.mxu1 %v3656_v31  ;;  %2897 = vmatprep.mubr.msk.f32.mxu1 %vm3079_vm0, %v3078_v1 }
0x1097   :  { %2891 = vmatprep.subr.mxu1 %v3078_v1 }
0x1098   :  { %2892 = vmatpush3.msra.mxu1 %v3665_v32 }
0x1099   :  { %2893 = vmatprep.subr.mxu1 %v3078_v1 }
0x109a   :  { %2894 = vmatpush3.msra.mxu1 %v3672_v33 }
0x109b   :  { %v1808_v34 = vpop.permute.xlu1 %1807  ;;  %2895 = vmatprep.subr.mxu1 %v3078_v1 }
0x109c   :  { %2887 = vmatmul.mubr.msk.f32.vlgmr.msra.gmra.mxu0 %vm175_vm8, %v1808_v34  ;;  %2896 = vmatpush3.msra.mxu1 %v3680_v35 }
0x109d   :  { %2898 = vmatmul.mubr.msk.f32.vlgmr.msra.gmra.mxu1 %vm175_vm8, %v1808_v34  ;;  %2901 = vmatpush3.msra.mxu0 %v3317_v22 }
0x109e   :  { %2902 = vmatprep.subr.mxu0 %v3078_v1  ;;  %2911 = vmatprep.subr.mxu1 %v3078_v1 }
0x109f   :  { %2903 = vmatpush3.msra.mxu0 %v3319_v23  ;;  %2912 = vmatpush3.msra.mxu1 %v3325_v24 }
0x10a0   :  { %2904 = vmatprep.subr.mxu0 %v3078_v1  ;;  %2913 = vmatprep.subr.mxu1 %v3078_v1 }
0x10a1   :  { %2905 = vmatpush3.msra.mxu0 %v3333_v26  ;;  %2914 = vmatpush3.msra.mxu1 %v3330_v25 }
0x10a2   :  { %2906 = vmatprep.subr.mxu0 %v3078_v1  ;;  %2908 = vmatprep.mubr.msk.f32.mxu0 %vm3079_vm0, %v3078_v1 }
0x10a3   :  { %2907 = vmatpush3.msra.mxu0 %v3344_v28  ;;  %2915 = vmatprep.subr.mxu1 %v3078_v1 }
0x10a4   :  { %2922 = vmatprep.subr.mxu0 %v3078_v1  ;;  %2916 = vmatpush3.msra.mxu1 %v3341_v27 }
0x10a5   :  { %2917 = vmatprep.subr.mxu1 %v3078_v1  ;;  %2919 = vmatprep.mubr.msk.f32.mxu1 %vm3079_vm0, %v3078_v1 }
0x10a6   :  { %2918 = vmatpush3.msra.mxu1 %v3354_v29 }
0x10a7   :  { %2933 = vmatprep.subr.mxu1 %v3078_v1 }
0x1155   :  { %v1801_v22 = vpop.f32.mrf.mxu1 }
0x1157   :  { %v2877_v23 = vpop.f32.mrf.mxu1 }
0x115c   :  { %v1877_v24 = vpop.f32.mrf.mxu0 }
0x115d   :  { %v1878_v25 = vadd.f32 %v1877_v24, %v1801_v22  ;;  %v1969_v26 = vpop.f32.mrf.mxu1 }
0x115e   :  { %v1974_v28 = vrot.slane %v1969_v26, 4  ;;  %v2888_v3 = vpop.f32.mrf.mxu0 }
0x115f   :  { %v1881_v37 = vadd.f32 %v3399_v36, %v1878_v25  ;;  %v2899_v38 = vpop.f32.mrf.mxu1 }
0x1160   :  { %v1976_v27 = vadd.f32 %v1974_v28, %v3298_v0 }
0x1161   :  { %v1882_v39 = vmul.f32 %v1881_v37, %v3302_v5 }
0x1162   :  { %v1977_v40 = vmul.f32 %v1976_v27, %v3302_v5 }
0x1163   :  { %3009 = vtanh.f32 %v1882_v39 }
0x1164   :  { %3011 = vtanh.f32 %v1977_v40 }
0x1170   :  { %v3010_v29 = vpop.eup %3009 }
0x1171   :  { %v3012_v41 = vpop.eup %3011  ;;  %v1884_v42 = vmul.f32 %v3010_v29, %v3302_v5 }
0x1172   :  { %v1979_v43 = vmul.f32 %v3012_v41, %v3302_v5 }
0x1173   :  { %v1885_v44 = vadd.f32 %v1884_v42, %v3308_v12 }
0x1174   :  { %v1980_v4 = vadd.f32 %v1979_v43, %v3308_v12 }
0x1175   :  { %1888 = vrot.lane.b32.xlu0 %v1885_v44, %s3081_s4  ;;  %v1886_v47 = vmul.f32 %v1885_v44, %v3641_v7  ;;  %v3036_v7 = vld [vmem:[#allocation5] sm:$0xff] }
0x1176   :  { %1986 = vrot.lane.b32.xlu1 %v1980_v4, %s3081_s4  ;;  %v1984_v49 = vmul.f32 %v1982_v46, %v1980_v4 }
0x11e7   :  { %v1889_v6 = vpop.permute.xlu0 %1888 }
0x11e8   :  { %v1891_v9 = vmul.f32 %v1889_v6, %v1885_v44  ;;  %v1987_v15 = vpop.permute.xlu1 %1986 }
0x11e9   :  { %v1989_v45 = vmul.f32 %v1987_v15, %v1980_v4 }
0x11ea   :  { %1893 = vrot.lane.b32.xlu0 %v1891_v9, %s3082_s16 }
0x11eb   :  { %1991 = vrot.lane.b32.xlu1 %v1989_v45, %s3082_s16 }
0x125c   :  { %v1894_v48 = vpop.permute.xlu0 %1893 }
0x125d   :  { %v3719_v50 = vadd.f32 %v1894_v48, %v1886_v47  ;;  %v1992_v51 = vpop.permute.xlu1 %1991 }
0x125e   :  { %v3721_v52 = vadd.f32 %v1992_v51, %v1984_v49  ;;  %v3041_v51 = vld [vmem:[%s3810_s7] ss:$0 sm:$0xff]  ;;  %s3083_s7 = smov 96  }
0x125f   :  { %3013 = vtanh.f32 %v3719_v50 }
0x1260   :  { %3015 = vtanh.f32 %v3721_v52  ;;  %v2253_v27 = vrot.slane %v3721_v52, 6 }
0x126c   :  { %v3014_v53 = vpop.eup %3013 }
0x126d   :  { %v3016_v54 = vpop.eup %3015  ;;  %1899 = vrot.lane.b32.xlu0 %v3014_v53, %s3081_s4 }
0x126e   :  { %1997 = vrot.lane.b32.xlu1 %v3016_v54, %s3081_s4 }
0x12df   :  { %v1900_v55 = vpop.permute.xlu0 %1899 }
0x12e0   :  { %v1902_v56 = vmul.f32 %v1900_v55, %v1885_v44  ;;  %v1998_v57 = vpop.permute.xlu1 %1997 }
0x12e1   :  { %v2000_v58 = vmul.f32 %v1998_v57, %v1980_v4 }
0x12e2   :  { %2002 = vrot.lane.b32.xlu0 %v1902_v56, %s3082_s16 }
0x12e3   :  { %v2077_v59 = vrot.slane %v2000_v58, 4 }
0x12e5   :  { %2078 = vrot.lane.b32.xlu1 %v2077_v59, %s3082_s16  ;;  %v2552_v59 = vld [vmem:[%s3811_s8 + $0x1] ss:$0 sm:$0xff] }
0x1354   :  { %v2003_v60 = vpop.permute.xlu0 %2002 }
0x1355   :  { %2909 = vmatmul.mubr.msk.f32.vlgmr.msra.gmra.mxu0 %vm175_vm8, %v2003_v60 }
0x1356   :  { %2923 = vmatpush3.msra.mxu0 %v3656_v31  ;;  %2930 = vmatprep.mubr.msk.f32.mxu0 %vm3079_vm0, %v3078_v1 }
0x1357   :  { %2924 = vmatprep.subr.mxu0 %v3078_v1  ;;  %v2079_v61 = vpop.permute.xlu1 %2078 }
0x1358   :  { %2925 = vmatpush3.msra.mxu0 %v3665_v32  ;;  %2920 = vmatmul.mubr.msk.f32.vlgmr.msra.gmra.mxu1 %vm175_vm8, %v2079_v61 }
0x1359   :  { %2926 = vmatprep.subr.mxu0 %v3078_v1  ;;  %2934 = vmatpush3.msra.mxu1 %v3033_v62 }
0x135a   :  { %2927 = vmatpush3.msra.mxu0 %v3672_v33  ;;  %2935 = vmatprep.subr.mxu1 %v3078_v1 }
0x135b   :  { %2928 = vmatprep.subr.mxu0 %v3078_v1  ;;  %2936 = vmatpush3.msra.mxu1 %v3034_v63 }
0x135c   :  { %2929 = vmatpush3.msra.mxu0 %v3680_v35  ;;  %2937 = vmatprep.subr.mxu1 %v3078_v1 }
0x135d   :  { %2931 = vmatmul.mubr.msk.f32.vlgmr.msra.gmra.mxu0 %vm175_vm8, %v2079_v61  ;;  %2938 = vmatpush3.msra.mxu1 %v3035_v2 }
0x135e   :  { %2939 = vmatprep.subr.mxu1 %v3078_v1  ;;  %2944 = vmatprep.subr.mxu0 %v3078_v1 }
0x135f   :  { %2940 = vmatpush3.msra.mxu1 %v3036_v7  ;;  %2941 = vmatprep.mubr.msk.f32.mxu1 %vm3079_vm0, %v3078_v1 }
0x1360   :  { %2945 = vmatpush3.msra.mxu0 %v3037_v8  ;;  %2952 = vmatprep.mubr.msk.f32.mxu0 %vm3079_vm0, %v3078_v1 }
0x1361   :  { %2946 = vmatprep.subr.mxu0 %v3078_v1 }
0x1362   :  { %2947 = vmatpush3.msra.mxu0 %v3038_v10 }
0x1363   :  { %2948 = vmatprep.subr.mxu0 %v3078_v1 }
0x1364   :  { %2949 = vmatpush3.msra.mxu0 %v3039_v11 }
0x1365   :  { %2950 = vmatprep.subr.mxu0 %v3078_v1 }
0x1366   :  { %2951 = vmatpush3.msra.mxu0 %v3040_v13 }
0x1415   :  { %v2072_v14 = vpop.f32.mrf.mxu0 }
0x1417   :  { %v2910_v16 = vpop.f32.mrf.mxu0 }
0x1418   :  { %v2148_v17 = vpop.f32.mrf.mxu1 }
0x1419   :  { %v2149_v18 = vadd.f32 %v2148_v17, %v2072_v14 }
0x141a   :  { %v2921_v19 = vpop.f32.mrf.mxu1 }
0x141b   :  { %v2152_v20 = vadd.f32 %v3399_v36, %v2149_v18  ;;  %v2553_v18 = vld [vmem:[#allocation4] ss:$0 sm:$0xff] }
0x141d   :  { %v2153_v21 = vmul.f32 %v2152_v20, %v3302_v5  ;;  %v2240_v30 = vpop.f32.mrf.mxu0 }
0x141e   :  { %v2245_v31 = vrot.slane %v2240_v30, 2 }
0x141f   :  { %3017 = vtanh.f32 %v2153_v21  ;;  %v2932_v32 = vpop.f32.mrf.mxu0 }
0x1420   :  { %v2247_v1 = vadd.f32 %v2245_v31, %v3298_v0 }
0x1422   :  { %v2248_v33 = vmul.f32 %v2247_v1, %v3302_v5 }
0x1424   :  { %3019 = vtanh.f32 %v2248_v33 }
0x142c   :  { %v3018_v34 = vpop.eup %3017 }
0x142d   :  { %v2155_v35 = vmul.f32 %v3018_v34, %v3302_v5 }
0x142f   :  { %v2156_v22 = vadd.f32 %v2155_v35, %v3308_v12 }
0x1431   :  { %v3020_v23 = vpop.eup %3019  ;;  %2159 = vrot.lane.b32.xlu1 %v2156_v22, %s3081_s4  ;;  %v2157_v3 = vmul.f32 %v2156_v22, %v3719_v50 }
0x1432   :  { %v2250_v36 = vmul.f32 %v3020_v23, %v3302_v5 }
0x1434   :  { %v2251_v24 = vadd.f32 %v2250_v36, %v3308_v12 }
0x1436   :  { %2257 = vrot.lane.b32.xlu0 %v2251_v24, %s3081_s4  ;;  %v2255_v39 = vmul.f32 %v2253_v27, %v2251_v24 }
0x14a3   :  { %v2160_v25 = vpop.permute.xlu1 %2159 }
0x14a4   :  { %v2162_v26 = vmul.f32 %v2160_v25, %v2156_v22 }
0x14a6   :  { %2164 = vrot.lane.b32.xlu1 %v2162_v26, %s3082_s16 }
0x14a8   :  { %v2258_v0 = vpop.permute.xlu0 %2257 }
0x14a9   :  { %v2260_v28 = vmul.f32 %v2258_v0, %v2251_v24 }
0x14ab   :  { %2262 = vrot.lane.b32.xlu0 %v2260_v28, %s3082_s16 }
0x1518   :  { %v2165_v37 = vpop.permute.xlu1 %2164 }
0x1519   :  { %v2167_v38 = vadd.f32 %v2165_v37, %v2157_v3 }
0x151b   :  { %3021 = vtanh.f32 %v2167_v38 }
0x151d   :  { %v2263_v40 = vpop.permute.xlu0 %2262 }
0x151e   :  { %v2265_v29 = vadd.f32 %v2263_v40, %v2255_v39 }
0x1520   :  { %3023 = vtanh.f32 %v2265_v29 }
0x1528   :  { %v3022_v41 = vpop.eup %3021 }
0x1529   :  { %2170 = vrot.lane.b32.xlu1 %v3022_v41, %s3081_s4 }
0x152d   :  { %v3024_v42 = vpop.eup %3023 }
0x152e   :  { %2268 = vrot.lane.b32.xlu0 %v3024_v42, %s3081_s4 }
0x159b   :  { %v2171_v43 = vpop.permute.xlu1 %2170 }
0x159c   :  { %v2173_v44 = vmul.f32 %v2171_v43, %v2156_v22 }
0x159e   :  { %2273 = vrot.lane.b32.xlu0 %v2173_v44, %s3082_s16 }
0x15a0   :  { %v2269_v4 = vpop.permute.xlu0 %2268 }
0x15a1   :  { %v2271_v6 = vmul.f32 %v2269_v4, %v2251_v24 }
0x15a3   :  { %v2348_v9 = vrot.slane %v2271_v6, 6 }
0x15a5   :  { %2349 = vrot.lane.b32.xlu1 %v2348_v9, %s3082_s16 }
0x1610   :  { %v2274_v15 = vpop.permute.xlu0 %2273 }
0x1611   :  { %2942 = vmatmul.mubr.msk.f32.vlgmr.msra.gmra.mxu1 %vm175_vm8, %v2274_v15 }
0x1617   :  { %v2350_v45 = vpop.permute.xlu1 %2349 }
0x1618   :  { %2953 = vmatmul.mubr.msk.f32.vlgmr.msra.gmra.mxu0 %vm175_vm8, %v2350_v45 }
0x16d1   :  { %v2343_v46 = vpop.f32.mrf.mxu1 }
0x16d3   :  { %v2943_v47 = vpop.f32.mrf.mxu1 }
0x16d8   :  { %v2419_v48 = vpop.f32.mrf.mxu0 }
0x16d9   :  { %v2420_v49 = vadd.f32 %v2419_v48, %v2343_v46 }
0x16da   :  { %v2954_v50 = vpop.f32.mrf.mxu0 }
0x16db   :  { %v2423_v52 = vadd.f32 %v3041_v51, %v2420_v49 }
0x16dd   :  { %v2424_v53 = vmul.f32 %v2423_v52, %v3302_v5 }
0x16df   :  { %3025 = vtanh.f32 %v2424_v53 }
0x16ec   :  { %v3026_v54 = vpop.eup %3025 }
0x16ed   :  { %v2426_v55 = vmul.f32 %v3026_v54, %v3302_v5  ;;  %v2550_v5 = vld [vmem:[%s3811_s8] ss:$0 sm:$0xff] }
0x16ef   :  { %v2427_v56 = vadd.f32 %v2426_v55, %v3308_v12 }
0x16f1   :  { %2430 = vrot.lane.b32.xlu0 %v2427_v56, %s3081_s4  ;;  %v2428_v60 = vmul.f32 %v2427_v56, %v2167_v38 }
0x1763   :  { %v2431_v57 = vpop.permute.xlu0 %2430 }
0x1764   :  { %v2433_v58 = vmul.f32 %v2431_v57, %v2427_v56 }
0x1766   :  { %2435 = vrot.lane.b32.xlu1 %v2433_v58, %s3082_s16 }
0x176a   :  { %2462 = vrot.lane.b32.xlu1 %v2552_v59, %s3083_s7 }
0x17d8   :  { %v2436_v61 = vpop.permute.xlu1 %2435 }
0x17d9   :  { %v2438_v62 = vadd.f32 %v2436_v61, %v2428_v60 }
0x17db   :  { %3027 = vtanh.f32 %v2438_v62 }
0x17dc   :  { %v2463_v2 = vpop.permute.xlu1 %2462 }
0x17e8   :  { %v3028_v63 = vpop.eup %3027 }
0x17e9   :  { %2441 = vrot.lane.b32.xlu0 %v3028_v63, %s3081_s4 }
0x17ed   :  { %2451 = vrot.lane.b32.xlu0 %v2550_v5, %s3083_s7 }
0x185b   :  { %v2442_v12 = vpop.permute.xlu0 %2441 }
0x185c   :  { %v2444_v7 = vmul.f32 %v2442_v12, %v2427_v56 }
0x185e   :  { %v2465_v8 = vmul.f32 %v2463_v2, %v2444_v7 }
0x185f   :  { %v2452_v10 = vpop.permute.xlu0 %2451 }
0x1860   :  { %v2467_v11 = vrot.slane %v2465_v8, 2  ;;  %v2454_v13 = vmul.f32 %v2452_v10, %v2271_v6 }
0x1862   :  { %v2469_v14 = vadd.f32 %v2467_v11, %v2454_v13 }
0x1864   :  { %2471 = vrot.lane.b32.xlu1 %v2469_v14, %s3082_s16 }
0x18d6   :  { %v2472_v16 = vpop.permute.xlu1 %2471 }
0x18d7   :  { %v2475_v17 = vsel %vm2474_vm11, %v2472_v16, 0.0 }
0x18d8   :  { %2476 = vadd.xlane.f32.xlu0 %v2475_v17 }
0x1961   :  { %v2477_v19 = vpop.xlane.xlu0 %2476 }
0x1962   :  { %v2485_v20 = vadd.f32 %v2553_v18, %v2477_v19 }
0x1964   :  { %2487 = vst.msk [vmem:[%s3812_s10 - $0x6] sm:$0xc0] %vm2486_vm12, %v2485_v20 }
0x1965   :  { %2492 = vsyncpa [#allocation6], 1 }

</bundles_post_ra>
